<compile_context>
chip_gen: v5e
topology: v5e:2x2
jax: 0.10.0
libtpu: 0.0.40
codegen_flags: <defaults>
</compile_context>

<pallas_src>
import math

import jax
import jax.numpy as jnp
from jax.experimental import pallas as pl
from jax.experimental.pallas import tpu as pltpu


# ----------------------------------------------------------------------------
# Fused whole-network kernel (one image per grid step, everything in VMEM)
# ----------------------------------------------------------------------------
def _network_kernel(x_ref,
                    w1_ref, b1_ref, w2_ref, b2_ref, r1_ref, s1_ref,
                    w3_ref, b3_ref, w4_ref, b4_ref, r2_ref, s2_ref,
                    wf_ref, bf_ref, o_ref):
    f32 = jnp.float32

    def conv3x3_relu(a, w_ref, b_ref, ho):
        # a: (Hin, Cin*Win); w_ref: (3, Cin*Win, Cout*Wo); b_ref: (1, Cout*Wo)
        acc = jnp.dot(a[0:ho, :], w_ref[0], preferred_element_type=f32)
        acc = acc + jnp.dot(a[1:ho + 1, :], w_ref[1], preferred_element_type=f32)
        acc = acc + jnp.dot(a[2:ho + 2, :], w_ref[2], preferred_element_type=f32)
        return jnp.maximum(acc + b_ref[...], 0.0)

    def maxpool2x2(a, r_ref, s_ref):
        # a: (H, C*W); r_ref: (2, H/2, H) row selectors; s_ref: (2, C*W, C*W/2)
        rmax = jnp.maximum(jnp.dot(r_ref[0], a, preferred_element_type=f32),
                           jnp.dot(r_ref[1], a, preferred_element_type=f32))
        return jnp.maximum(jnp.dot(rmax, s_ref[0], preferred_element_type=f32),
                           jnp.dot(rmax, s_ref[1], preferred_element_type=f32))

    a = x_ref[0].astype(f32)                       # (28, 28)  == (H, Cin*W), Cin=1
    a = conv3x3_relu(a, w1_ref, b1_ref, 26)        # (26, 10*26)
    a = conv3x3_relu(a, w2_ref, b2_ref, 24)        # (24,  8*24)
    a = maxpool2x2(a, r1_ref, s1_ref)              # (12,  8*12)
    a = conv3x3_relu(a, w3_ref, b3_ref, 10)        # (10,  6*10)
    a = conv3x3_relu(a, w4_ref, b4_ref, 8)         # ( 8,  4* 8)
    a = maxpool2x2(a, r2_ref, s2_ref)              # ( 4,  4* 4)

    # fc (torch NCHW .view flatten order folded into wf_ref) + softmax
    logits = bf_ref[...]                           # (1, 10)
    for h in range(4):                             # static, unrolled
        logits = logits + jnp.dot(a[h:h + 1, :], wf_ref[h],
                                  preferred_element_type=f32)
    m = jnp.max(logits, axis=-1, keepdims=True)
    e = jnp.exp(logits - m)
    o_ref[0] = (e / jnp.sum(e, axis=-1, keepdims=True)).astype(o_ref.dtype)


# ----------------------------------------------------------------------------
# Host-side weight preparation (tiny, done once, outside the hot path)
# ----------------------------------------------------------------------------
def _conv_banded_weights(w, w_in):
    """w: (Cout, Cin, 3, 3) torch-layout weight -> (3, Cin*Win, Cout*Wo) so that
    conv(act)[co, i, j] == sum_kh (act2d[i+kh, :] @ M[kh])[co*Wo + j]
    with act2d[h, ci*Win + x] == act[ci, h, x]."""
    cout, cin, _, _ = w.shape
    wo = w_in - 2
    # S[kw, wi, j] = 1 iff wi == j + kw
    s = (jnp.arange(w_in)[None, :, None]
         == (jnp.arange(wo)[None, None, :] + jnp.arange(3)[:, None, None]))
    s = s.astype(w.dtype)
    m = jnp.einsum("oihk,kab->hiaob", w, s)        # (3, Cin, Win, Cout, Wo)
    return m.reshape(3, cin * w_in, cout * wo)


def _pool_selectors(c, h, w, dtype=jnp.float32):
    """0/1 selection matrices implementing MaxPool2d(2,2) on the (H, C*W) layout."""
    hp, wp = h // 2, w // 2
    r = (jnp.arange(h)[None, None, :]
         == (2 * jnp.arange(hp)[None, :, None] + jnp.arange(2)[:, None, None]))
    rr = jnp.arange(c * w)
    qq = jnp.arange(c * wp)
    s = ((rr[None, :, None] // w == qq[None, None, :] // wp)
         & (rr[None, :, None] % w
            == 2 * (qq[None, None, :] % wp) + jnp.arange(2)[:, None, None]))
    return r.astype(dtype), s.astype(dtype)


def prepare_params(p):
    """Torch-layout params -> kernel-ready operands (< 1 MiB total)."""
    def brow(b, wo):
        return jnp.repeat(b, wo)[None, :]          # index co*Wo + j -> b[co]

    w1 = _conv_banded_weights(p["w1"], 28); b1 = brow(p["b1"], 26)
    w2 = _conv_banded_weights(p["w2"], 26); b2 = brow(p["b2"], 24)
    w3 = _conv_banded_weights(p["w3"], 12); b3 = brow(p["b3"], 10)
    w4 = _conv_banded_weights(p["w4"], 10); b4 = brow(p["b4"], 8)
    r1, s1 = _pool_selectors(8, 24, 24)            # after conv2: (24, 8*24)
    r2, s2 = _pool_selectors(4, 8, 8)              # after conv4: ( 8, 4* 8)
    # fc: logits[o] = sum_{c,h,w} act[c,h,w] * wf[o, c*16 + h*4 + w] + bf[o]
    wf = p["wf"].reshape(10, 4, 4, 4).transpose(2, 1, 3, 0).reshape(4, 16, 10)
    bf = p["bf"][None, :]
    return dict(w1=w1, b1=b1, w2=w2, b2=b2, w3=w3, b3=b3, w4=w4, b4=b4,
                r1=r1, s1=s1, r2=r2, s2=s2, wf=wf, bf=bf)


# ----------------------------------------------------------------------------
# Forward pass: a single pallas_call gridded over the batch
# ----------------------------------------------------------------------------
@jax.jit
def network_forward(x, kp):
    assert x.shape[1:] == (1, 28, 28), x.shape     # fc(64) implies 28x28 input
    n = x.shape[0]
    x2 = x.reshape(n, 28, 28).astype(jnp.float32)  # single input channel

    def const3(a):
        return pl.BlockSpec(a.shape, lambda i: (0, 0, 0))

    def const2(a):
        return pl.BlockSpec(a.shape, lambda i: (0, 0))

    out = pl.pallas_call(
        _network_kernel,
        out_shape=jax.ShapeDtypeStruct((n, 1, 10), jnp.float32),
        grid=(n,),
        in_specs=[
            pl.BlockSpec((1, 28, 28), lambda i: (i, 0, 0)),
            const3(kp["w1"]), const2(kp["b1"]),
            const3(kp["w2"]), const2(kp["b2"]),
            const3(kp["r1"]), const3(kp["s1"]),
            const3(kp["w3"]), const2(kp["b3"]),
            const3(kp["w4"]), const2(kp["b4"]),
            const3(kp["r2"]), const3(kp["s2"]),
            const3(kp["wf"]), const2(kp["bf"]),
        ],
        out_specs=pl.BlockSpec((1, 1, 10), lambda i: (i, 0, 0)),
        compiler_params=pltpu.CompilerParams(dimension_semantics=("parallel",)),
    )(x2, kp["w1"], kp["b1"], kp["w2"], kp["b2"], kp["r1"], kp["s1"],
      kp["w3"], kp["b3"], kp["w4"], kp["b4"], kp["r2"], kp["s2"],
      kp["wf"], kp["bf"])
    return out.reshape(n, 10)


# ----------------------------------------------------------------------------
# Deterministic parameter init (torch-default-style uniform) and reference
# ----------------------------------------------------------------------------
def init_params(key):
    def conv_init(k, cout, cin, ksz=3):
        k1, k2 = jax.random.split(k)
        bound = 1.0 / math.sqrt(cin * ksz * ksz)
        w = jax.random.uniform(k1, (cout, cin, ksz, ksz), jnp.float32, -bound, bound)
        b = jax.random.uniform(k2, (cout,), jnp.float32, -bound, bound)
        return w, b

    keys = jax.random.split(key, 5)
    w1, b1 = conv_init(keys[0], 10, 1)
    w2, b2 = conv_init(keys[1], 8, 10)
    w3, b3 = conv_init(keys[2], 6, 8)
    w4, b4 = conv_init(keys[3], 4, 6)
    kf1, kf2 = jax.random.split(keys[4])
    bound = 1.0 / math.sqrt(64)
    wf = jax.random.uniform(kf1, (10, 64), jnp.float32, -bound, bound)
    bf = jax.random.uniform(kf2, (10,), jnp.float32, -bound, bound)
    return dict(w1=w1, b1=b1, w2=w2, b2=b2, w3=w3, b3=b3, w4=w4, b4=b4, wf=wf, bf=bf)


def reference_forward(x, p):
    def conv(x, w, b):
        y = jax.lax.conv_general_dilated(
            x, w, (1, 1), "VALID",
            dimension_numbers=("NCHW", "OIHW", "NCHW"),
            precision=jax.lax.Precision.HIGHEST,
        )
        return jax.nn.relu(y + b[None, :, None, None])

    def pool(x):
        return jnp.maximum(
            jnp.maximum(x[:, :, 0::2, 0::2], x[:, :, 0::2, 1::2]),
            jnp.maximum(x[:, :, 1::2, 0::2], x[:, :, 1::2, 1::2]),
        )

    x = conv(x, p["w1"], p["b1"])
    x = conv(x, p["w2"], p["b2"])
    x = pool(x)
    x = conv(x, p["w3"], p["b3"])
    x = conv(x, p["w4"], p["b4"])
    x = pool(x)
    flat = x.reshape(x.shape[0], -1)
    logits = flat @ p["wf"].T + p["bf"]
    return jax.nn.softmax(logits, axis=1)


if __name__ == "__main__":
    key = jax.random.PRNGKey(0)
    k_params, k_x = jax.random.split(key)
    params = init_params(k_params)
    # fc expects 64 flattened features => input must be 28x28 (MNIST-sized).
    x = jax.random.normal(k_x, (2, 1, 28, 28), dtype=jnp.float32)

    prepped = prepare_params(params)
    out = jax.block_until_ready(network_forward(x, prepped))
    ref = jax.block_until_ready(reference_forward(x, params))

    assert out.shape == (2, 10), out.shape
    assert jnp.allclose(jnp.sum(out, axis=1), 1.0, atol=1e-4), "softmax rows must sum to 1"
    if not jnp.allclose(out, ref, atol=3e-3, rtol=3e-3):
        raise SystemExit(f"mismatch vs reference: max abs diff {jnp.max(jnp.abs(out - ref))}")

    print("KERNEL_OK")
</pallas_src>

<mosaic_0001>
module attributes {stable_mosaic.version = 11 : i64} {
  func.func @_network_kernel(%arg0: i32, %arg1: memref<1x28x28xf32, #tpu.memory_space<vmem>>, %arg2: memref<3x28x260xf32, #tpu.memory_space<vmem>>, %arg3: memref<1x260xf32, #tpu.memory_space<vmem>>, %arg4: memref<3x260x192xf32, #tpu.memory_space<vmem>>, %arg5: memref<1x192xf32, #tpu.memory_space<vmem>>, %arg6: memref<2x12x24xf32, #tpu.memory_space<vmem>>, %arg7: memref<2x192x96xf32, #tpu.memory_space<vmem>>, %arg8: memref<3x96x60xf32, #tpu.memory_space<vmem>>, %arg9: memref<1x60xf32, #tpu.memory_space<vmem>>, %arg10: memref<3x60x32xf32, #tpu.memory_space<vmem>>, %arg11: memref<1x32xf32, #tpu.memory_space<vmem>>, %arg12: memref<2x4x8xf32, #tpu.memory_space<vmem>>, %arg13: memref<2x32x16xf32, #tpu.memory_space<vmem>>, %arg14: memref<4x16x10xf32, #tpu.memory_space<vmem>>, %arg15: memref<1x10xf32, #tpu.memory_space<vmem>>, %arg16: memref<1x1x10xf32, #tpu.memory_space<vmem>>) attributes {dimension_semantics = [#tpu.dimension_semantics<parallel>], iteration_bounds = array<i64: 2>, scalar_prefetch = 0 : i64, scratch_operands = 0 : i64, tpu.core_type = #tpu.core_type<tc>, window_params = [{transform_indices = @transform_0, window_bounds = array<i64: 1, 28, 28>}, {pipeline_mode = #tpu.pipeline_mode<synchronous>, transform_indices = @transform_1, window_bounds = array<i64: 3, 28, 260>}, {pipeline_mode = #tpu.pipeline_mode<synchronous>, transform_indices = @transform_2, window_bounds = array<i64: 1, 260>}, {pipeline_mode = #tpu.pipeline_mode<synchronous>, transform_indices = @transform_3, window_bounds = array<i64: 3, 260, 192>}, {pipeline_mode = #tpu.pipeline_mode<synchronous>, transform_indices = @transform_4, window_bounds = array<i64: 1, 192>}, {pipeline_mode = #tpu.pipeline_mode<synchronous>, transform_indices = @transform_5, window_bounds = array<i64: 2, 12, 24>}, {pipeline_mode = #tpu.pipeline_mode<synchronous>, transform_indices = @transform_6, window_bounds = array<i64: 2, 192, 96>}, {pipeline_mode = #tpu.pipeline_mode<synchronous>, transform_indices = @transform_7, window_bounds = array<i64: 3, 96, 60>}, {pipeline_mode = #tpu.pipeline_mode<synchronous>, transform_indices = @transform_8, window_bounds = array<i64: 1, 60>}, {pipeline_mode = #tpu.pipeline_mode<synchronous>, transform_indices = @transform_9, window_bounds = array<i64: 3, 60, 32>}, {pipeline_mode = #tpu.pipeline_mode<synchronous>, transform_indices = @transform_10, window_bounds = array<i64: 1, 32>}, {pipeline_mode = #tpu.pipeline_mode<synchronous>, transform_indices = @transform_11, window_bounds = array<i64: 2, 4, 8>}, {pipeline_mode = #tpu.pipeline_mode<synchronous>, transform_indices = @transform_12, window_bounds = array<i64: 2, 32, 16>}, {pipeline_mode = #tpu.pipeline_mode<synchronous>, transform_indices = @transform_13, window_bounds = array<i64: 4, 16, 10>}, {pipeline_mode = #tpu.pipeline_mode<synchronous>, transform_indices = @transform_14, window_bounds = array<i64: 1, 10>}, {transform_indices = @transform_15, window_bounds = array<i64: 1, 1, 10>}]} {
    %c0 = arith.constant 0 : index
    %c0_0 = arith.constant 0 : index
    %c0_1 = arith.constant 0 : index
    %0 = vector.load %arg1[%c0, %c0_0, %c0_1] : memref<1x28x28xf32, #tpu.memory_space<vmem>>, vector<1x28x28xf32>
    %1 = vector.shape_cast %0 : vector<1x28x28xf32> to vector<28x28xf32>
    %2 = vector.extract_strided_slice %1 {offsets = [0, 0], sizes = [26, 28], strides = [1, 1]} : vector<28x28xf32> to vector<26x28xf32>
    %c0_2 = arith.constant 0 : index
    %c0_3 = arith.constant 0 : index
    %c0_4 = arith.constant 0 : index
    %3 = vector.load %arg2[%c0_2, %c0_3, %c0_4] : memref<3x28x260xf32, #tpu.memory_space<vmem>>, vector<1x28x260xf32>
    %4 = vector.shape_cast %3 : vector<1x28x260xf32> to vector<28x260xf32>
    %cst = arith.constant dense<0.000000e+00> : vector<26x260xf32>
    %5 = tpu.matmul %2, %4, %cst {dimension_numbers = #tpu.dot_dimension_numbers<[1], [0], [0], [1], [0, 0, 1, 1], [], []>} : vector<26x28xf32>, vector<28x260xf32>, vector<26x260xf32> -> vector<26x260xf32>
    %6 = vector.extract_strided_slice %1 {offsets = [1, 0], sizes = [26, 28], strides = [1, 1]} : vector<28x28xf32> to vector<26x28xf32>
    %c1 = arith.constant 1 : index
    %c0_5 = arith.constant 0 : index
    %c0_6 = arith.constant 0 : index
    %7 = vector.load %arg2[%c1, %c0_5, %c0_6] : memref<3x28x260xf32, #tpu.memory_space<vmem>>, vector<1x28x260xf32>
    %8 = vector.shape_cast %7 : vector<1x28x260xf32> to vector<28x260xf32>
    %cst_7 = arith.constant dense<0.000000e+00> : vector<26x260xf32>
    %9 = tpu.matmul %6, %8, %cst_7 {dimension_numbers = #tpu.dot_dimension_numbers<[1], [0], [0], [1], [0, 0, 1, 1], [], []>} : vector<26x28xf32>, vector<28x260xf32>, vector<26x260xf32> -> vector<26x260xf32>
    %10 = arith.addf %5, %9 : vector<26x260xf32>
    %11 = vector.extract_strided_slice %1 {offsets = [2, 0], sizes = [26, 28], strides = [1, 1]} : vector<28x28xf32> to vector<26x28xf32>
    %c2 = arith.constant 2 : index
    %c0_8 = arith.constant 0 : index
    %c0_9 = arith.constant 0 : index
    %12 = vector.load %arg2[%c2, %c0_8, %c0_9] : memref<3x28x260xf32, #tpu.memory_space<vmem>>, vector<1x28x260xf32>
    %13 = vector.shape_cast %12 : vector<1x28x260xf32> to vector<28x260xf32>
    %cst_10 = arith.constant dense<0.000000e+00> : vector<26x260xf32>
    %14 = tpu.matmul %11, %13, %cst_10 {dimension_numbers = #tpu.dot_dimension_numbers<[1], [0], [0], [1], [0, 0, 1, 1], [], []>} : vector<26x28xf32>, vector<28x260xf32>, vector<26x260xf32> -> vector<26x260xf32>
    %15 = arith.addf %10, %14 : vector<26x260xf32>
    %c0_11 = arith.constant 0 : index
    %c0_12 = arith.constant 0 : index
    %16 = vector.load %arg3[%c0_11, %c0_12] : memref<1x260xf32, #tpu.memory_space<vmem>>, vector<1x260xf32>
    %17 = vector.broadcast %16 : vector<1x260xf32> to vector<26x260xf32>
    %18 = arith.addf %15, %17 : vector<26x260xf32>
    %cst_13 = arith.constant 0.000000e+00 : f32
    %19 = vector.broadcast %cst_13 : f32 to vector<26x260xf32>
    %20 = arith.maximumf %18, %19 : vector<26x260xf32>
    %21 = vector.extract_strided_slice %20 {offsets = [0, 0], sizes = [24, 260], strides = [1, 1]} : vector<26x260xf32> to vector<24x260xf32>
    %c0_14 = arith.constant 0 : index
    %c0_15 = arith.constant 0 : index
    %c0_16 = arith.constant 0 : index
    %22 = vector.load %arg4[%c0_14, %c0_15, %c0_16] : memref<3x260x192xf32, #tpu.memory_space<vmem>>, vector<1x260x192xf32>
    %23 = vector.shape_cast %22 : vector<1x260x192xf32> to vector<260x192xf32>
    %cst_17 = arith.constant dense<0.000000e+00> : vector<24x192xf32>
    %24 = tpu.matmul %21, %23, %cst_17 {dimension_numbers = #tpu.dot_dimension_numbers<[1], [0], [0], [1], [0, 0, 1, 1], [], []>} : vector<24x260xf32>, vector<260x192xf32>, vector<24x192xf32> -> vector<24x192xf32>
    %25 = vector.extract_strided_slice %20 {offsets = [1, 0], sizes = [24, 260], strides = [1, 1]} : vector<26x260xf32> to vector<24x260xf32>
    %c1_18 = arith.constant 1 : index
    %c0_19 = arith.constant 0 : index
    %c0_20 = arith.constant 0 : index
    %26 = vector.load %arg4[%c1_18, %c0_19, %c0_20] : memref<3x260x192xf32, #tpu.memory_space<vmem>>, vector<1x260x192xf32>
    %27 = vector.shape_cast %26 : vector<1x260x192xf32> to vector<260x192xf32>
    %cst_21 = arith.constant dense<0.000000e+00> : vector<24x192xf32>
    %28 = tpu.matmul %25, %27, %cst_21 {dimension_numbers = #tpu.dot_dimension_numbers<[1], [0], [0], [1], [0, 0, 1, 1], [], []>} : vector<24x260xf32>, vector<260x192xf32>, vector<24x192xf32> -> vector<24x192xf32>
    %29 = arith.addf %24, %28 : vector<24x192xf32>
    %30 = vector.extract_strided_slice %20 {offsets = [2, 0], sizes = [24, 260], strides = [1, 1]} : vector<26x260xf32> to vector<24x260xf32>
    %c2_22 = arith.constant 2 : index
    %c0_23 = arith.constant 0 : index
    %c0_24 = arith.constant 0 : index
    %31 = vector.load %arg4[%c2_22, %c0_23, %c0_24] : memref<3x260x192xf32, #tpu.memory_space<vmem>>, vector<1x260x192xf32>
    %32 = vector.shape_cast %31 : vector<1x260x192xf32> to vector<260x192xf32>
    %cst_25 = arith.constant dense<0.000000e+00> : vector<24x192xf32>
    %33 = tpu.matmul %30, %32, %cst_25 {dimension_numbers = #tpu.dot_dimension_numbers<[1], [0], [0], [1], [0, 0, 1, 1], [], []>} : vector<24x260xf32>, vector<260x192xf32>, vector<24x192xf32> -> vector<24x192xf32>
    %34 = arith.addf %29, %33 : vector<24x192xf32>
    %c0_26 = arith.constant 0 : index
    %c0_27 = arith.constant 0 : index
    %35 = vector.load %arg5[%c0_26, %c0_27] : memref<1x192xf32, #tpu.memory_space<vmem>>, vector<1x192xf32>
    %36 = vector.broadcast %35 : vector<1x192xf32> to vector<24x192xf32>
    %37 = arith.addf %34, %36 : vector<24x192xf32>
    %cst_28 = arith.constant 0.000000e+00 : f32
    %38 = vector.broadcast %cst_28 : f32 to vector<24x192xf32>
    %39 = arith.maximumf %37, %38 : vector<24x192xf32>
    %c0_29 = arith.constant 0 : index
    %c0_30 = arith.constant 0 : index
    %c0_31 = arith.constant 0 : index
    %40 = vector.load %arg6[%c0_29, %c0_30, %c0_31] : memref<2x12x24xf32, #tpu.memory_space<vmem>>, vector<1x12x24xf32>
    %41 = vector.shape_cast %40 : vector<1x12x24xf32> to vector<12x24xf32>
    %cst_32 = arith.constant dense<0.000000e+00> : vector<12x192xf32>
    %42 = tpu.matmul %41, %39, %cst_32 {dimension_numbers = #tpu.dot_dimension_numbers<[1], [0], [0], [1], [0, 0, 1, 1], [], []>} : vector<12x24xf32>, vector<24x192xf32>, vector<12x192xf32> -> vector<12x192xf32>
    %c1_33 = arith.constant 1 : index
    %c0_34 = arith.constant 0 : index
    %c0_35 = arith.constant 0 : index
    %43 = vector.load %arg6[%c1_33, %c0_34, %c0_35] : memref<2x12x24xf32, #tpu.memory_space<vmem>>, vector<1x12x24xf32>
    %44 = vector.shape_cast %43 : vector<1x12x24xf32> to vector<12x24xf32>
    %cst_36 = arith.constant dense<0.000000e+00> : vector<12x192xf32>
    %45 = tpu.matmul %44, %39, %cst_36 {dimension_numbers = #tpu.dot_dimension_numbers<[1], [0], [0], [1], [0, 0, 1, 1], [], []>} : vector<12x24xf32>, vector<24x192xf32>, vector<12x192xf32> -> vector<12x192xf32>
    %46 = arith.maximumf %42, %45 : vector<12x192xf32>
    %c0_37 = arith.constant 0 : index
    %c0_38 = arith.constant 0 : index
    %c0_39 = arith.constant 0 : index
    %47 = vector.load %arg7[%c0_37, %c0_38, %c0_39] : memref<2x192x96xf32, #tpu.memory_space<vmem>>, vector<1x192x96xf32>
    %48 = vector.shape_cast %47 : vector<1x192x96xf32> to vector<192x96xf32>
    %cst_40 = arith.constant dense<0.000000e+00> : vector<12x96xf32>
    %49 = tpu.matmul %46, %48, %cst_40 {dimension_numbers = #tpu.dot_dimension_numbers<[1], [0], [0], [1], [0, 0, 1, 1], [], []>} : vector<12x192xf32>, vector<192x96xf32>, vector<12x96xf32> -> vector<12x96xf32>
    %c1_41 = arith.constant 1 : index
    %c0_42 = arith.constant 0 : index
    %c0_43 = arith.constant 0 : index
    %50 = vector.load %arg7[%c1_41, %c0_42, %c0_43] : memref<2x192x96xf32, #tpu.memory_space<vmem>>, vector<1x192x96xf32>
    %51 = vector.shape_cast %50 : vector<1x192x96xf32> to vector<192x96xf32>
    %cst_44 = arith.constant dense<0.000000e+00> : vector<12x96xf32>
    %52 = tpu.matmul %46, %51, %cst_44 {dimension_numbers = #tpu.dot_dimension_numbers<[1], [0], [0], [1], [0, 0, 1, 1], [], []>} : vector<12x192xf32>, vector<192x96xf32>, vector<12x96xf32> -> vector<12x96xf32>
    %53 = arith.maximumf %49, %52 : vector<12x96xf32>
    %54 = vector.extract_strided_slice %53 {offsets = [0, 0], sizes = [10, 96], strides = [1, 1]} : vector<12x96xf32> to vector<10x96xf32>
    %c0_45 = arith.constant 0 : index
    %c0_46 = arith.constant 0 : index
    %c0_47 = arith.constant 0 : index
    %55 = vector.load %arg8[%c0_45, %c0_46, %c0_47] : memref<3x96x60xf32, #tpu.memory_space<vmem>>, vector<1x96x60xf32>
    %56 = vector.shape_cast %55 : vector<1x96x60xf32> to vector<96x60xf32>
    %cst_48 = arith.constant dense<0.000000e+00> : vector<10x60xf32>
    %57 = tpu.matmul %54, %56, %cst_48 {dimension_numbers = #tpu.dot_dimension_numbers<[1], [0], [0], [1], [0, 0, 1, 1], [], []>} : vector<10x96xf32>, vector<96x60xf32>, vector<10x60xf32> -> vector<10x60xf32>
    %58 = vector.extract_strided_slice %53 {offsets = [1, 0], sizes = [10, 96], strides = [1, 1]} : vector<12x96xf32> to vector<10x96xf32>
    %c1_49 = arith.constant 1 : index
    %c0_50 = arith.constant 0 : index
    %c0_51 = arith.constant 0 : index
    %59 = vector.load %arg8[%c1_49, %c0_50, %c0_51] : memref<3x96x60xf32, #tpu.memory_space<vmem>>, vector<1x96x60xf32>
    %60 = vector.shape_cast %59 : vector<1x96x60xf32> to vector<96x60xf32>
    %cst_52 = arith.constant dense<0.000000e+00> : vector<10x60xf32>
    %61 = tpu.matmul %58, %60, %cst_52 {dimension_numbers = #tpu.dot_dimension_numbers<[1], [0], [0], [1], [0, 0, 1, 1], [], []>} : vector<10x96xf32>, vector<96x60xf32>, vector<10x60xf32> -> vector<10x60xf32>
    %62 = arith.addf %57, %61 : vector<10x60xf32>
    %63 = vector.extract_strided_slice %53 {offsets = [2, 0], sizes = [10, 96], strides = [1, 1]} : vector<12x96xf32> to vector<10x96xf32>
    %c2_53 = arith.constant 2 : index
    %c0_54 = arith.constant 0 : index
    %c0_55 = arith.constant 0 : index
    %64 = vector.load %arg8[%c2_53, %c0_54, %c0_55] : memref<3x96x60xf32, #tpu.memory_space<vmem>>, vector<1x96x60xf32>
    %65 = vector.shape_cast %64 : vector<1x96x60xf32> to vector<96x60xf32>
    %cst_56 = arith.constant dense<0.000000e+00> : vector<10x60xf32>
    %66 = tpu.matmul %63, %65, %cst_56 {dimension_numbers = #tpu.dot_dimension_numbers<[1], [0], [0], [1], [0, 0, 1, 1], [], []>} : vector<10x96xf32>, vector<96x60xf32>, vector<10x60xf32> -> vector<10x60xf32>
    %67 = arith.addf %62, %66 : vector<10x60xf32>
    %c0_57 = arith.constant 0 : index
    %c0_58 = arith.constant 0 : index
    %68 = vector.load %arg9[%c0_57, %c0_58] : memref<1x60xf32, #tpu.memory_space<vmem>>, vector<1x60xf32>
    %69 = vector.broadcast %68 : vector<1x60xf32> to vector<10x60xf32>
    %70 = arith.addf %67, %69 : vector<10x60xf32>
    %cst_59 = arith.constant 0.000000e+00 : f32
    %71 = vector.broadcast %cst_59 : f32 to vector<10x60xf32>
    %72 = arith.maximumf %70, %71 : vector<10x60xf32>
    %73 = vector.extract_strided_slice %72 {offsets = [0, 0], sizes = [8, 60], strides = [1, 1]} : vector<10x60xf32> to vector<8x60xf32>
    %c0_60 = arith.constant 0 : index
    %c0_61 = arith.constant 0 : index
    %c0_62 = arith.constant 0 : index
    %74 = vector.load %arg10[%c0_60, %c0_61, %c0_62] : memref<3x60x32xf32, #tpu.memory_space<vmem>>, vector<1x60x32xf32>
    %75 = vector.shape_cast %74 : vector<1x60x32xf32> to vector<60x32xf32>
    %cst_63 = arith.constant dense<0.000000e+00> : vector<8x32xf32>
    %76 = tpu.matmul %73, %75, %cst_63 {dimension_numbers = #tpu.dot_dimension_numbers<[1], [0], [0], [1], [0, 0, 1, 1], [], []>} : vector<8x60xf32>, vector<60x32xf32>, vector<8x32xf32> -> vector<8x32xf32>
    %77 = vector.extract_strided_slice %72 {offsets = [1, 0], sizes = [8, 60], strides = [1, 1]} : vector<10x60xf32> to vector<8x60xf32>
    %c1_64 = arith.constant 1 : index
    %c0_65 = arith.constant 0 : index
    %c0_66 = arith.constant 0 : index
    %78 = vector.load %arg10[%c1_64, %c0_65, %c0_66] : memref<3x60x32xf32, #tpu.memory_space<vmem>>, vector<1x60x32xf32>
    %79 = vector.shape_cast %78 : vector<1x60x32xf32> to vector<60x32xf32>
    %cst_67 = arith.constant dense<0.000000e+00> : vector<8x32xf32>
    %80 = tpu.matmul %77, %79, %cst_67 {dimension_numbers = #tpu.dot_dimension_numbers<[1], [0], [0], [1], [0, 0, 1, 1], [], []>} : vector<8x60xf32>, vector<60x32xf32>, vector<8x32xf32> -> vector<8x32xf32>
    %81 = arith.addf %76, %80 : vector<8x32xf32>
    %82 = vector.extract_strided_slice %72 {offsets = [2, 0], sizes = [8, 60], strides = [1, 1]} : vector<10x60xf32> to vector<8x60xf32>
    %c2_68 = arith.constant 2 : index
    %c0_69 = arith.constant 0 : index
    %c0_70 = arith.constant 0 : index
    %83 = vector.load %arg10[%c2_68, %c0_69, %c0_70] : memref<3x60x32xf32, #tpu.memory_space<vmem>>, vector<1x60x32xf32>
    %84 = vector.shape_cast %83 : vector<1x60x32xf32> to vector<60x32xf32>
    %cst_71 = arith.constant dense<0.000000e+00> : vector<8x32xf32>
    %85 = tpu.matmul %82, %84, %cst_71 {dimension_numbers = #tpu.dot_dimension_numbers<[1], [0], [0], [1], [0, 0, 1, 1], [], []>} : vector<8x60xf32>, vector<60x32xf32>, vector<8x32xf32> -> vector<8x32xf32>
    %86 = arith.addf %81, %85 : vector<8x32xf32>
    %c0_72 = arith.constant 0 : index
    %c0_73 = arith.constant 0 : index
    %87 = vector.load %arg11[%c0_72, %c0_73] : memref<1x32xf32, #tpu.memory_space<vmem>>, vector<1x32xf32>
    %88 = vector.broadcast %87 : vector<1x32xf32> to vector<8x32xf32>
    %89 = arith.addf %86, %88 : vector<8x32xf32>
    %cst_74 = arith.constant 0.000000e+00 : f32
    %90 = vector.broadcast %cst_74 : f32 to vector<8x32xf32>
    %91 = arith.maximumf %89, %90 : vector<8x32xf32>
    %c0_75 = arith.constant 0 : index
    %c0_76 = arith.constant 0 : index
    %c0_77 = arith.constant 0 : index
    %92 = vector.load %arg12[%c0_75, %c0_76, %c0_77] : memref<2x4x8xf32, #tpu.memory_space<vmem>>, vector<1x4x8xf32>
    %93 = vector.shape_cast %92 : vector<1x4x8xf32> to vector<4x8xf32>
    %cst_78 = arith.constant dense<0.000000e+00> : vector<4x32xf32>
    %94 = tpu.matmul %93, %91, %cst_78 {dimension_numbers = #tpu.dot_dimension_numbers<[1], [0], [0], [1], [0, 0, 1, 1], [], []>} : vector<4x8xf32>, vector<8x32xf32>, vector<4x32xf32> -> vector<4x32xf32>
    %c1_79 = arith.constant 1 : index
    %c0_80 = arith.constant 0 : index
    %c0_81 = arith.constant 0 : index
    %95 = vector.load %arg12[%c1_79, %c0_80, %c0_81] : memref<2x4x8xf32, #tpu.memory_space<vmem>>, vector<1x4x8xf32>
    %96 = vector.shape_cast %95 : vector<1x4x8xf32> to vector<4x8xf32>
    %cst_82 = arith.constant dense<0.000000e+00> : vector<4x32xf32>
    %97 = tpu.matmul %96, %91, %cst_82 {dimension_numbers = #tpu.dot_dimension_numbers<[1], [0], [0], [1], [0, 0, 1, 1], [], []>} : vector<4x8xf32>, vector<8x32xf32>, vector<4x32xf32> -> vector<4x32xf32>
    %98 = arith.maximumf %94, %97 : vector<4x32xf32>
    %c0_83 = arith.constant 0 : index
    %c0_84 = arith.constant 0 : index
    %c0_85 = arith.constant 0 : index
    %99 = vector.load %arg13[%c0_83, %c0_84, %c0_85] : memref<2x32x16xf32, #tpu.memory_space<vmem>>, vector<1x32x16xf32>
    %100 = vector.shape_cast %99 : vector<1x32x16xf32> to vector<32x16xf32>
    %cst_86 = arith.constant dense<0.000000e+00> : vector<4x16xf32>
    %101 = tpu.matmul %98, %100, %cst_86 {dimension_numbers = #tpu.dot_dimension_numbers<[1], [0], [0], [1], [0, 0, 1, 1], [], []>} : vector<4x32xf32>, vector<32x16xf32>, vector<4x16xf32> -> vector<4x16xf32>
    %c1_87 = arith.constant 1 : index
    %c0_88 = arith.constant 0 : index
    %c0_89 = arith.constant 0 : index
    %102 = vector.load %arg13[%c1_87, %c0_88, %c0_89] : memref<2x32x16xf32, #tpu.memory_space<vmem>>, vector<1x32x16xf32>
    %103 = vector.shape_cast %102 : vector<1x32x16xf32> to vector<32x16xf32>
    %cst_90 = arith.constant dense<0.000000e+00> : vector<4x16xf32>
    %104 = tpu.matmul %98, %103, %cst_90 {dimension_numbers = #tpu.dot_dimension_numbers<[1], [0], [0], [1], [0, 0, 1, 1], [], []>} : vector<4x32xf32>, vector<32x16xf32>, vector<4x16xf32> -> vector<4x16xf32>
    %105 = arith.maximumf %101, %104 : vector<4x16xf32>
    %c0_91 = arith.constant 0 : index
    %c0_92 = arith.constant 0 : index
    %106 = vector.load %arg15[%c0_91, %c0_92] : memref<1x10xf32, #tpu.memory_space<vmem>>, vector<1x10xf32>
    %107 = vector.extract_strided_slice %105 {offsets = [0, 0], sizes = [1, 16], strides = [1, 1]} : vector<4x16xf32> to vector<1x16xf32>
    %c0_93 = arith.constant 0 : index
    %c0_94 = arith.constant 0 : index
    %c0_95 = arith.constant 0 : index
    %108 = vector.load %arg14[%c0_93, %c0_94, %c0_95] : memref<4x16x10xf32, #tpu.memory_space<vmem>>, vector<1x16x10xf32>
    %109 = vector.shape_cast %108 : vector<1x16x10xf32> to vector<16x10xf32>
    %cst_96 = arith.constant dense<0.000000e+00> : vector<1x10xf32>
    %110 = tpu.matmul %107, %109, %cst_96 {dimension_numbers = #tpu.dot_dimension_numbers<[1], [0], [0], [1], [0, 0, 1, 1], [], []>} : vector<1x16xf32>, vector<16x10xf32>, vector<1x10xf32> -> vector<1x10xf32>
    %111 = arith.addf %106, %110 : vector<1x10xf32>
    %112 = vector.extract_strided_slice %105 {offsets = [1, 0], sizes = [1, 16], strides = [1, 1]} : vector<4x16xf32> to vector<1x16xf32>
    %c1_97 = arith.constant 1 : index
    %c0_98 = arith.constant 0 : index
    %c0_99 = arith.constant 0 : index
    %113 = vector.load %arg14[%c1_97, %c0_98, %c0_99] : memref<4x16x10xf32, #tpu.memory_space<vmem>>, vector<1x16x10xf32>
    %114 = vector.shape_cast %113 : vector<1x16x10xf32> to vector<16x10xf32>
    %cst_100 = arith.constant dense<0.000000e+00> : vector<1x10xf32>
    %115 = tpu.matmul %112, %114, %cst_100 {dimension_numbers = #tpu.dot_dimension_numbers<[1], [0], [0], [1], [0, 0, 1, 1], [], []>} : vector<1x16xf32>, vector<16x10xf32>, vector<1x10xf32> -> vector<1x10xf32>
    %116 = arith.addf %111, %115 : vector<1x10xf32>
    %117 = vector.extract_strided_slice %105 {offsets = [2, 0], sizes = [1, 16], strides = [1, 1]} : vector<4x16xf32> to vector<1x16xf32>
    %c2_101 = arith.constant 2 : index
    %c0_102 = arith.constant 0 : index
    %c0_103 = arith.constant 0 : index
    %118 = vector.load %arg14[%c2_101, %c0_102, %c0_103] : memref<4x16x10xf32, #tpu.memory_space<vmem>>, vector<1x16x10xf32>
    %119 = vector.shape_cast %118 : vector<1x16x10xf32> to vector<16x10xf32>
    %cst_104 = arith.constant dense<0.000000e+00> : vector<1x10xf32>
    %120 = tpu.matmul %117, %119, %cst_104 {dimension_numbers = #tpu.dot_dimension_numbers<[1], [0], [0], [1], [0, 0, 1, 1], [], []>} : vector<1x16xf32>, vector<16x10xf32>, vector<1x10xf32> -> vector<1x10xf32>
    %121 = arith.addf %116, %120 : vector<1x10xf32>
    %122 = vector.extract_strided_slice %105 {offsets = [3, 0], sizes = [1, 16], strides = [1, 1]} : vector<4x16xf32> to vector<1x16xf32>
    %c3 = arith.constant 3 : index
    %c0_105 = arith.constant 0 : index
    %c0_106 = arith.constant 0 : index
    %123 = vector.load %arg14[%c3, %c0_105, %c0_106] : memref<4x16x10xf32, #tpu.memory_space<vmem>>, vector<1x16x10xf32>
    %124 = vector.shape_cast %123 : vector<1x16x10xf32> to vector<16x10xf32>
    %cst_107 = arith.constant dense<0.000000e+00> : vector<1x10xf32>
    %125 = tpu.matmul %122, %124, %cst_107 {dimension_numbers = #tpu.dot_dimension_numbers<[1], [0], [0], [1], [0, 0, 1, 1], [], []>} : vector<1x16xf32>, vector<16x10xf32>, vector<1x10xf32> -> vector<1x10xf32>
    %126 = arith.addf %121, %125 : vector<1x10xf32>
    %cst_108 = arith.constant dense<0xFF800000> : vector<1xf32>
    %127 = vector.multi_reduction <maximumf>, %126, %cst_108 [1] : vector<1x10xf32> to vector<1xf32>
    %128 = vector.shape_cast %127 : vector<1xf32> to vector<1x1xf32>
    %129 = vector.broadcast %128 : vector<1x1xf32> to vector<1x10xf32>
    %130 = arith.subf %126, %129 : vector<1x10xf32>
    %131 = math.exp %130 : vector<1x10xf32>
    %cst_109 = arith.constant dense<0.000000e+00> : vector<1xf32>
    %132 = vector.multi_reduction <add>, %131, %cst_109 [1] : vector<1x10xf32> to vector<1xf32>
    %133 = vector.shape_cast %132 : vector<1xf32> to vector<1x1xf32>
    %134 = vector.broadcast %133 : vector<1x1xf32> to vector<1x10xf32>
    %135 = arith.divf %131, %134 : vector<1x10xf32>
    %c0_110 = arith.constant 0 : index
    %c0_111 = arith.constant 0 : index
    %c0_112 = arith.constant 0 : index
    %136 = vector.load %arg16[%c0_110, %c0_111, %c0_112] : memref<1x1x10xf32, #tpu.memory_space<vmem>>, vector<1x1x10xf32>
    %137 = vector.shape_cast %136 : vector<1x1x10xf32> to vector<1x10xf32>
    %138 = vector.shape_cast %135 : vector<1x10xf32> to vector<1x1x10xf32>
    tpu.vector_store %arg16[%c0_110, %c0_111, %c0_112], %138 {strides = array<i32>} : memref<1x1x10xf32, #tpu.memory_space<vmem>>, vector<1x1x10xf32>,
    return
  }
  func.func @transform_0(%arg0: i32) -> (i32, i32, i32) {
    %c0_i32 = arith.constant 0 : i32
    %c0_i32_0 = arith.constant 0 : i32
    %c0_i32_1 = arith.constant 0 : i32
    return %arg0, %c0_i32, %c0_i32_0 : i32, i32, i32
  }
  func.func @transform_1(%arg0: i32) -> (i32, i32, i32) {
    %c0_i32 = arith.constant 0 : i32
    %c0_i32_0 = arith.constant 0 : i32
    %c0_i32_1 = arith.constant 0 : i32
    %c0_i32_2 = arith.constant 0 : i32
    return %c0_i32, %c0_i32_0, %c0_i32_1 : i32, i32, i32
  }
  func.func @transform_2(%arg0: i32) -> (i32, i32) {
    %c0_i32 = arith.constant 0 : i32
    %c0_i32_0 = arith.constant 0 : i32
    %c0_i32_1 = arith.constant 0 : i32
    return %c0_i32, %c0_i32_0 : i32, i32
  }
  func.func @transform_3(%arg0: i32) -> (i32, i32, i32) {
    %c0_i32 = arith.constant 0 : i32
    %c0_i32_0 = arith.constant 0 : i32
    %c0_i32_1 = arith.constant 0 : i32
    %c0_i32_2 = arith.constant 0 : i32
    return %c0_i32, %c0_i32_0, %c0_i32_1 : i32, i32, i32
  }
  func.func @transform_4(%arg0: i32) -> (i32, i32) {
    %c0_i32 = arith.constant 0 : i32
    %c0_i32_0 = arith.constant 0 : i32
    %c0_i32_1 = arith.constant 0 : i32
    return %c0_i32, %c0_i32_0 : i32, i32
  }
  func.func @transform_5(%arg0: i32) -> (i32, i32, i32) {
    %c0_i32 = arith.constant 0 : i32
    %c0_i32_0 = arith.constant 0 : i32
    %c0_i32_1 = arith.constant 0 : i32
    %c0_i32_2 = arith.constant 0 : i32
    return %c0_i32, %c0_i32_0, %c0_i32_1 : i32, i32, i32
  }
  func.func @transform_6(%arg0: i32) -> (i32, i32, i32) {
    %c0_i32 = arith.constant 0 : i32
    %c0_i32_0 = arith.constant 0 : i32
    %c0_i32_1 = arith.constant 0 : i32
    %c0_i32_2 = arith.constant 0 : i32
    return %c0_i32, %c0_i32_0, %c0_i32_1 : i32, i32, i32
  }
  func.func @transform_7(%arg0: i32) -> (i32, i32, i32) {
    %c0_i32 = arith.constant 0 : i32
    %c0_i32_0 = arith.constant 0 : i32
    %c0_i32_1 = arith.constant 0 : i32
    %c0_i32_2 = arith.constant 0 : i32
    return %c0_i32, %c0_i32_0, %c0_i32_1 : i32, i32, i32
  }
  func.func @transform_8(%arg0: i32) -> (i32, i32) {
    %c0_i32 = arith.constant 0 : i32
    %c0_i32_0 = arith.constant 0 : i32
    %c0_i32_1 = arith.constant 0 : i32
    return %c0_i32, %c0_i32_0 : i32, i32
  }
  func.func @transform_9(%arg0: i32) -> (i32, i32, i32) {
    %c0_i32 = arith.constant 0 : i32
    %c0_i32_0 = arith.constant 0 : i32
    %c0_i32_1 = arith.constant 0 : i32
    %c0_i32_2 = arith.constant 0 : i32
    return %c0_i32, %c0_i32_0, %c0_i32_1 : i32, i32, i32
  }
  func.func @transform_10(%arg0: i32) -> (i32, i32) {
    %c0_i32 = arith.constant 0 : i32
    %c0_i32_0 = arith.constant 0 : i32
    %c0_i32_1 = arith.constant 0 : i32
    return %c0_i32, %c0_i32_0 : i32, i32
  }
  func.func @transform_11(%arg0: i32) -> (i32, i32, i32) {
    %c0_i32 = arith.constant 0 : i32
    %c0_i32_0 = arith.constant 0 : i32
    %c0_i32_1 = arith.constant 0 : i32
    %c0_i32_2 = arith.constant 0 : i32
    return %c0_i32, %c0_i32_0, %c0_i32_1 : i32, i32, i32
  }
  func.func @transform_12(%arg0: i32) -> (i32, i32, i32) {
    %c0_i32 = arith.constant 0 : i32
    %c0_i32_0 = arith.constant 0 : i32
    %c0_i32_1 = arith.constant 0 : i32
    %c0_i32_2 = arith.constant 0 : i32
    return %c0_i32, %c0_i32_0, %c0_i32_1 : i32, i32, i32
  }
  func.func @transform_13(%arg0: i32) -> (i32, i32, i32) {
    %c0_i32 = arith.constant 0 : i32
    %c0_i32_0 = arith.constant 0 : i32
    %c0_i32_1 = arith.constant 0 : i32
    %c0_i32_2 = arith.constant 0 : i32
    return %c0_i32, %c0_i32_0, %c0_i32_1 : i32, i32, i32
  }
  func.func @transform_14(%arg0: i32) -> (i32, i32) {
    %c0_i32 = arith.constant 0 : i32
    %c0_i32_0 = arith.constant 0 : i32
    %c0_i32_1 = arith.constant 0 : i32
    return %c0_i32, %c0_i32_0 : i32, i32
  }
  func.func @transform_15(%arg0: i32) -> (i32, i32, i32) {
    %c0_i32 = arith.constant 0 : i32
    %c0_i32_0 = arith.constant 0 : i32
    %c0_i32_1 = arith.constant 0 : i32
    return %arg0, %c0_i32, %c0_i32_0 : i32, i32, i32
  }
}

</mosaic_0001>

<bundles_post_ra>
// kernel: network_forward.1
= control target key start
LH: loop header
LB: loop body
LE: loop exit
PB: predicated region body
PF: predicated region fallthrough
CT: control target
= control target key end

     0   :  { %s3977_s0 = inlined_call_operand.vmem [shape: f32[2,28,28], index: 0, kind: input, shape index: {}]   ;;  %s3978_s1 = inlined_call_operand.vmem [shape: f32[3,28,260], index: 1, kind: input, shape index: {}]   ;;  %s3979_s2 = inlined_call_operand.vmem [shape: f32[1,260], index: 2, kind: input, shape index: {}]   ;;  %s3980_s3 = inlined_call_operand.hbm [shape: f32[3,260,192], index: 3, kind: input, shape index: {}]   ;;  %s3981_s4 = inlined_call_operand.vmem [shape: f32[1,192], index: 4, kind: input, shape index: {}]   ;;  %s3982_s5 = inlined_call_operand.vmem [shape: f32[2,12,24], index: 5, kind: input, shape index: {}]   ;;  %s3983_s6 = inlined_call_operand.vmem [shape: f32[2,192,96], index: 6, kind: input, shape index: {}]   ;;  %s3984_s7 = inlined_call_operand.vmem [shape: f32[3,96,60], index: 7, kind: input, shape index: {}]   ;;  %s3985_s8 = inlined_call_operand.vmem [shape: f32[1,60], index: 8, kind: input, shape index: {}]   ;;  %s3986_s9 = inlined_call_operand.vmem [shape: f32[3,60,32], index: 9, kind: input, shape index: {}]   ;;  %s3987_s10 = inlined_call_operand.vmem [shape: f32[1,32], index: 10, kind: input, shape index: {}]   ;;  %s3988_s11 = inlined_call_operand.vmem [shape: f32[2,4,8], index: 11, kind: input, shape index: {}]   ;;  %s3989_s12 = inlined_call_operand.vmem [shape: f32[2,32,16], index: 12, kind: input, shape index: {}]   ;;  %s3990_s13 = inlined_call_operand.vmem [shape: f32[4,16,10], index: 13, kind: input, shape index: {}]   ;;  %s3991_s14 = inlined_call_operand.vmem [shape: f32[1,10], index: 14, kind: input, shape index: {}]   ;;  %s3992_s15 = inlined_call_operand.hbm [shape: f32[2,1,10], index: 15, kind: output, shape index: {}]  }
   0x1   :  { %3997 = sst [smem:[#allocation12_spill]] %s3980_s3 }
   0x2   :  { %20 = vsyncpa [#allocation3], 0 }
   0x3   :  { %21 = vsyncpa [#allocation4], 0 }
   0x4   :  { %23 = vsyncpa [#allocation4 + $0x1], 0  ;;  %s3015_s18 = smov 0   ;;  %s3017_s19 = smov 0  }
   0x5   :  { %s3019_s20 = smov 0   ;;  %s3021_s21 = smov 0  }
   0x6 LB: > { %3998 = sst [smem:[#allocation8_spill]] %s2926_s20  ;;  %s3036_s22 = sadd.s32 4294967295, %s2930_s21   ;;  %s2930_s21 = sphi %s3021_s21, %s4006_s21   ;;  %s2926_s20 = sphi %s3019_s20, %s4008_s20   ;;  %s2922_s19 = sphi %s3017_s19, %s4010_s19   ;;  %s2918_s18 = sphi %s3015_s18, %s4009_s18  }
   0x7   : > { %s2563_s23 = sadd.s32 4294967294, %s2930_s21   ;;  %s3040_s24 = sadd.s32 1, %s2930_s21  }
   0x8   : > { %3999 = sst [smem:[#allocation9_spill]] %s3040_s24  ;;  %s356_s25 = sadd.s32 1, %s2926_s20 }
   0x9   : > { %s353_s26 = ssub.s32 %s2930_s21, %s3040_s24  ;;  %p366_p0 = scmp.ne.s32.totalorder %s2926_s20, %s2922_s19 }
   0xa   : > { %p354_p1 = scmp.eq.s32.totalorder %s353_s26, 0  ;;  %p367_p2 = scmp.eq.s32.totalorder %s3036_s22, 1 }
   0xb   : > { %p372_p3 = scmp.ne.s32.totalorder %s2922_s19, %s2918_s18  ;;  %p373_p4 = scmp.eq.s32.totalorder %s2563_s23, 1 }
   0xc   : > { %s3051_s27 = scalar_select %p354_p1, %s2926_s20, %s356_s25  }
   0xd   : > { %p3053_p5 = por %p367_p2, %p366_p0  ;;  %p3057_p6 = por %p373_p4, %p372_p3 }
   0xe   : > { %4000 = sst [smem:[#allocation10_spill]] %s3051_s27  ;;  %p2564_p7 = scmp.ge.s32.totalorder %s2930_s21, 1 }
   0xf   : > { %s4002_s29 = scalar_select %p3057_p6, 1, 0 }
  0x10   : > { %p380_p8 = scmp.lt.s32.totalorder %s2930_s21, 3  ;;  %p2790_p9 = scmp.eq.s32.totalorder %s3036_s22, 0 }
  0x11   : > { %4003 = sst [smem:[#allocation11_spill]] %s4002_s29  ;;  %s2932_s23 = smov [#allocation2]  }
  0x12   : > { %p381_p10 = pnand %p2564_p7, %p380_p8  ;;  %s4004_s3 = sld [smem:[#allocation12_spill]] }
  0x13   : > { %s399_s25 = sshll.u32 %s2932_s23, 4  ;;  %s2933_s26 = smov 256   ;;  %s400_s25 = int_to_ptr.vmem [resolvable:$true] %s399_s25 }
  0x14   : > { %p2782_p11 = pneg %p381_p10  ;;  %s2934_s27 = smov 16  }
  0x15   : > { %456 = sbr.rel (%p381_p10) target bundleno = 1741 (0x6cd), region = 80 }
  0x16   : > { %p2783_p12 = pnand %p2790_p9, %p2782_p11 }
  0x18   : > { %s397_s17 = sshll.u32 %s4004_s3, 4  ;;  %s398_s17 = int_to_ptr.hbm [resolvable:$true] %s397_s17 }
  0x19   : > { %2785 = dma.hbm_to_vmem [thread:$0]  (!%p2783_p12), %s398_s17, 25344, %s400_s25, [#allocation3], %s2933_s26, %s2933_s26, %s2934_s27  }
  0x1a   : > { %2909 = dma.done.wait (%p2790_p9), [#allocation3], 25344  }
  0x1b   : > { %2911 = vsyncadd (%p2790_p9), [#allocation3], 4294941952  ;;  %p504_p13 = scmp.lt.s32.totalorder %s3036_s22, 1  ;;  %vm559_vm0 = vcmask 1043456   ;;  %v2580_v0 = vld [vmem:[%s3978_s1 + $0xa8] sm:$0xf] }
  0x1c   : > { %v2582_v1 = vld [vmem:[%s3978_s1 + $0xb8] sm:$0xf]  ;;  %v522_v2 = vld [vmem:[%s3978_s1 + $0x48] sm:$0xf]  ;;  %2583 = vmatpush.msk.msra.mxu0 %vm559_vm0, %v2580_v0  ;;  %v2577_v3 = vld [vmem:[%s3978_s1 + $0x90] sm:$0xff]  ;;  %vm542_vm1 = vcmask 1046528  }
  0x1d   : > { %s505_s30 = scalar_select %p504_p13, %s3036_s22, 1  ;;  %2593 = vmatpush.msk.msra.mxu2 %vm559_vm0, %v2582_v1  ;;  %v2579_v4 = vld [vmem:[%s3978_s1 + $0xa0] sm:$0xff]  ;;  %v519_v5 = vld [vmem:[%s3978_s1 + $0x30] sm:$0xff]  ;;  %2598 = vmatpush.msk.msra.mxu3 %vm559_vm0, %v522_v2  ;;  %v2574_v6 = vld [vmem:[%s3978_s1 + $0x78] sm:$0xff]  ;;  %vm550_vm2 = vcmask 228352   ;;  %vm773_vm3 = vcmask 1045504  }
  0x1e   : > { %v2576_v7 = vld [vmem:[%s3978_s1 + $0x88] sm:$0xff]  ;;  %582 = vmatpush.msra.mxu0 %v2577_v3  ;;  %v516_v8 = vld [vmem:[%s3978_s1 + $0x18] sm:$0xff]  ;;  %v2571_v9 = vld [vmem:[%s3978_s1 + $0x60] sm:$0xff]  ;;  %vm1101_vm4 = vcmask 31744   ;;  %vm1726_vm5 = vcmask 195584   ;;  %vm1862_vm6 = vcmask 523264  }
  0x1f   : > { %s2775_s16 = sshll.u32 %s505_s30, 5  ;;  %640 = vmatpush.msra.mxu2 %v2579_v4  ;;  %686 = vmatpush.msra.mxu3 %v519_v5  ;;  %v2573_v10 = vld [vmem:[%s3978_s1 + $0x70] sm:$0xff]  ;;  %v513_v13 = vld [vmem:[%s3978_s1] sm:$0xff]  ;;  %v2578_v19 = vld [vmem:[%s3978_s1 + $0x98] sm:$0xff]  ;;  %vm2018_vm7 = vcmask 785408   ;;  %vm2148_vm8 = vcmask 490496  }
  0x20   : > { %s3098_s27 = scalar_lea.vmem %s3977_s0, %s2775_s16  ;;  %583 = vmatpush.msra.mxu0 %v2574_v6  ;;  %v2581_v16 = vld [vmem:[%s3978_s1 + $0xb0] sm:$0xf]  ;;  %v2622_v21 = vld [vmem:[%s3978_s1 + $0x108] sm:$0xf]  ;;  %v2575_v24 = vld [vmem:[%s3978_s1 + $0x80] sm:$0xff]  ;;  %vm2244_vm9 = vcmask 64512   ;;  %s2492_s16 = scalar_lea.hbm %s3992_s15, %s3036_s22 }
  0x21   : > { %v3117_v11 = vld [vmem:[%s3098_s27] sm:$0xff]  ;;  %v3120_v12 = vld [vmem:[%s3098_s27 + $0x8] sm:$0xff]  ;;  %641 = vmatpush.msra.mxu2 %v2576_v7  ;;  %687 = vmatpush.msra.mxu3 %v516_v8  ;;  %v3131_v17 = vld [vmem:[%s3098_s27 + $0x10] sm:$0xff]  ;;  %vm2298_vm10 = vcmask 261120   ;;  %vm2351_vm11 = vcmask 130048   ;;  %vm2457_vm12 = vcmask 73728  }
  0x22   : > { %v543_v14 = vrot.slane %v3117_v11, 1  ;;  %v544_v15 = vrot.slane %v3120_v12, 1  ;;  %2588 = vmatpush.msk.msra.mxu1 %vm559_vm0, %v2581_v16  ;;  %584 = vmatpush.msra.mxu0 %v2571_v9  ;;  %v523_v20 = vld [vmem:[%s3978_s1 + $0x50] sm:$0xf]  ;;  %v546_v23 = vrot.slane %v3131_v17, 1  ;;  %v520_v25 = vld [vmem:[%s3978_s1 + $0x38] sm:$0xff] }
  0x23   : > { %642 = vmatpush.msra.mxu2 %v2573_v10  ;;  %688 = vmatpush.msra.mxu3 %v513_v13  ;;  %v2623_v22 = vld [vmem:[%s3978_s1 + $0x110] sm:$0xf]  ;;  %v2572_v26 = vld [vmem:[%s3978_s1 + $0x68] sm:$0xff]  ;;  %v2620_v28 = vld [vmem:[%s3978_s1 + $0xf8] sm:$0xff]  ;;  %v774_v46 = vrot.slane %v3117_v11, 2  ;;  %v775_v47 = vrot.slane %v3120_v12, 2 }
  0x24   : > { %v545_v18 = vsel %vm542_vm1, %v543_v14, %v544_v15  ;;  %2599 = vmatmul.msk.f32.vlgmr.msra.gmra.mxu3 %vm550_vm2, %v3117_v11  ;;  %611 = vmatpush.msra.mxu1 %v2578_v19  ;;  %v2619_v27 = vld [vmem:[%s3978_s1 + $0xf0] sm:$0xff]  ;;  %v517_v29 = vld [vmem:[%s3978_s1 + $0x20] sm:$0xff]  ;;  %v2616_v30 = vld [vmem:[%s3978_s1 + $0xd8] sm:$0xff]  ;;  %v547_v31 = vsel %vm542_vm1, %v544_v15, %v546_v23  ;;  %v777_v50 = vrot.slane %v3131_v17, 2  ;;  %s2496_s24 = sshll.u32 %s2492_s16, 4  ;;  %s2884_s30 = scalar_lea.hbm %s3992_s15, 2  ;;  %s2497_s24 = int_to_ptr.hbm [resolvable:$true] %s2496_s24 }
  0x25   : > { %2584 = vmatmul.msk.f32.vlgmr.msra.gmra.mxu0 %vm550_vm2, %v545_v18  ;;  %2594 = vmatmul.msk.f32.vlgmr.msra.gmra.mxu2 %vm550_vm2, %v545_v18  ;;  %v2617_v32 = vld [vmem:[%s3978_s1 + $0xe0] sm:$0xff]  ;;  %v3181_v33 = vld [vmem:[%s3098_s27 + $0x18] sm:$0xf]  ;;  %v514_v34 = vld [vmem:[%s3978_s1 + $0x8] sm:$0xff]  ;;  %v776_v49 = vsel %vm773_vm3, %v774_v46, %v775_v47  ;;  %s502_s27 = sand.u32 1, %s2922_s19   ;;  %s2878_s25 = sshra.s32 %s2497_s24, 4  ;;  %s2879_s25 = int_to_ptr.hbm [resolvable:$true] %s2878_s25 }
  0x26   : > { %2603 = vmatpush.msk.msrb.mxu0 %vm559_vm0, %v523_v20  ;;  %2625 = vmatpush.msk.msrb.mxu2 %vm559_vm0, %v2622_v21  ;;  %v2613_v35 = vld [vmem:[%s3978_s1 + $0xc0] sm:$0xff]  ;;  %v2614_v36 = vld [vmem:[%s3978_s1 + $0xc8] sm:$0xff]  ;;  %v548_v37 = vrot.slane %v3181_v33, 1  ;;  %v524_v38 = vld [vmem:[%s3978_s1 + $0x58] sm:$0xf]  ;;  %v778_v51 = vsel %vm773_vm3, %v775_v47, %v777_v50  ;;  %v779_v52 = vrot.slane %v3181_v33, 2  ;;  %p2885_p3 = scmp.lt.s32.totalorder %s2879_s25, %s3992_s15 }
  0x27   : > { %2630 = vmatpush.msk.msrb.mxu3 %vm559_vm0, %v2623_v22  ;;  %612 = vmatpush.msra.mxu1 %v2575_v24  ;;  %v521_v39 = vld [vmem:[%s3978_s1 + $0x40] sm:$0xff]  ;;  %v518_v41 = vld [vmem:[%s3978_s1 + $0x28] sm:$0xff]  ;;  %v515_v42 = vld [vmem:[%s3978_s1 + $0x10] sm:$0xff]  ;;  %s503_s23 = scalar_lea.vmem [#allocation5], %s502_s27  ;;  %s2484_s17 = scalar_lea.sflag [#allocation4], %s502_s27 }
  0x28   : > { %715 = vmatpush.msrb.mxu0 %v520_v25  ;;  %811 = vmatpush.msrb.mxu2 %v2619_v27  ;;  %v549_v40 = vsel %vm542_vm1, %v546_v23, %v548_v37  ;;  %v2624_v43 = vld [vmem:[%s3978_s1 + $0x118] sm:$0xf]  ;;  %v2621_v44 = vld [vmem:[%s3978_s1 + $0x100] sm:$0xff]  ;;  %v2618_v45 = vld [vmem:[%s3978_s1 + $0xe8] sm:$0xff]  ;;  %v780_v53 = vsel %vm773_vm3, %v777_v50, %v779_v52  ;;  %s2494_s20 = sshll.u32 %s503_s23, 4  ;;  %s2880_s22 = scalar_lea.hbm %s2879_s25, 1  ;;  %s2495_s20 = int_to_ptr.vmem [resolvable:$true] %s2494_s20 }
  0x29   : > { %840 = vmatpush.msrb.mxu3 %v2620_v28  ;;  %613 = vmatpush.msra.mxu1 %v2572_v26  ;;  %v2615_v48 = vld [vmem:[%s3978_s1 + $0xd0] sm:$0xff]  ;;  %v1026_v54 = vld [vmem:[#allocation2 + $0x300] sm:$0xff]  ;;  %v1027_v2 = vld [vmem:[#allocation2 + $0x308] sm:$0xff]  ;;  %p2881_p0 = scmp.ne.s32.totalorder %s2879_s25, %s2880_s22  ;;  %p2886_p4 = scmp.lt.s32.totalorder %s2884_s30, %s2880_s22 }
  0x2a   : > { %716 = vmatpush.msrb.mxu0 %v517_v29  ;;  %2589 = vmatmul.msk.f32.vlgmr.msra.gmra.mxu1 %vm550_vm2, %v545_v18  ;;  %v1024_v55 = vld [vmem:[#allocation2 + $0x2f0] sm:$0xff]  ;;  %v1022_v56 = vld [vmem:[#allocation2 + $0x2e0] sm:$0xff]  ;;  %v1025_v5 = vld [vmem:[#allocation2 + $0x2f8] sm:$0xff] }
  0x2b   : > { %812 = vmatpush.msrb.mxu2 %v2616_v30  ;;  %841 = vmatpush.msrb.mxu3 %v2617_v32  ;;  %v1020_v57 = vld [vmem:[#allocation2 + $0x2d0] sm:$0xff]  ;;  %v1018_v58 = vld [vmem:[#allocation2 + $0x2c0] sm:$0xff]  ;;  %v1023_v8 = vld [vmem:[#allocation2 + $0x2e8] sm:$0xff]  ;;  %p2882_p1 = pnand %p2881_p0, %p3053_p5  ;;  %p2887_p7 = por %p2886_p4, %p2885_p3 }
  0x2c   : > { %2600 = vmatmul.msk.f32.gmra.mxu3 %vm550_vm2, %v3120_v12  ;;  %717 = vmatpush.msrb.mxu0 %v514_v34  ;;  %v1016_v59 = vld [vmem:[#allocation2 + $0x2b0] sm:$0xff]  ;;  %v1014_v60 = vld [vmem:[#allocation2 + $0x2a0] sm:$0xff]  ;;  %v1019_v15 = vld [vmem:[#allocation2 + $0x2c8] sm:$0xff] }
  0x2d   : > { %2585 = vmatmul.msk.f32.gmra.mxu0 %vm550_vm2, %v547_v31  ;;  %2595 = vmatmul.msk.f32.gmra.mxu2 %vm550_vm2, %v547_v31  ;;  %v1012_v61 = vld [vmem:[#allocation2 + $0x290] sm:$0xff]  ;;  %v1010_v62 = vld [vmem:[#allocation2 + $0x280] sm:$0xff]  ;;  %v1017_v18 = vld [vmem:[#allocation2 + $0x2b8] sm:$0xff]  ;;  %p2883_p2 = pneg %p2882_p1 }
  0x2e   : > { %813 = vmatpush.msrb.mxu2 %v2613_v35  ;;  %842 = vmatpush.msrb.mxu3 %v2614_v36  ;;  %v1008_v63 = vld [vmem:[#allocation2 + $0x270] sm:$0xff]  ;;  %v1006_v0 = vld [vmem:[#allocation2 + $0x260] sm:$0xff]  ;;  %v1059_v19 = vld [vmem:[#allocation2 + $0x408] sm:$0xff] }
  0x2f   : > { %2608 = vmatpush.msk.msrb.mxu1 %vm559_vm0, %v524_v38  ;;  %2635 = vmatpush.msk.msra.mxu0 %vm559_vm0, %v2624_v43  ;;  %v1058_v1 = vld [vmem:[#allocation2 + $0x400] sm:$0xff]  ;;  %v1004_v3 = vld [vmem:[#allocation2 + $0x250] sm:$0xff]  ;;  %v1015_v21 = vld [vmem:[#allocation2 + $0x2a8] sm:$0xff]  ;;  %p2888_p8 = pnand %p2887_p7, %p2883_p2 }
  0x30   : > { %1140 = vmatpush.msra.mxu2 %v1058_v1  ;;  %v1056_v4 = vld [vmem:[#allocation2 + $0x3f0] sm:$0xff]  ;;  %v1002_v6 = vld [vmem:[#allocation2 + $0x240] sm:$0xff]  ;;  %v1057_v22 = vld [vmem:[#allocation2 + $0x3f8] sm:$0xff] }
  0x31   : > { %744 = vmatpush.msrb.mxu1 %v521_v39  ;;  %869 = vmatpush.msra.mxu0 %v2621_v44  ;;  %v1054_v7 = vld [vmem:[#allocation2 + $0x3e0] sm:$0xff]  ;;  %v1000_v9 = vld [vmem:[#allocation2 + $0x230] sm:$0xff]  ;;  %v1013_v26 = vld [vmem:[#allocation2 + $0x298] sm:$0xff] }
  0x32   : > { %2590 = vmatmul.msk.f32.gmra.mxu1 %vm550_vm2, %v547_v31  ;;  %1141 = vmatpush.msra.mxu2 %v1056_v4  ;;  %v1052_v10 = vld [vmem:[#allocation2 + $0x3d0] sm:$0xff]  ;;  %v998_v13 = vld [vmem:[#allocation2 + $0x220] sm:$0xff]  ;;  %v1055_v28 = vld [vmem:[#allocation2 + $0x3e8] sm:$0xff] }
  0x33   : > { %745 = vmatpush.msrb.mxu1 %v518_v41  ;;  %870 = vmatpush.msra.mxu0 %v2618_v45  ;;  %v1050_v14 = vld [vmem:[#allocation2 + $0x3c0] sm:$0xff]  ;;  %v996_v16 = vld [vmem:[#allocation2 + $0x210] sm:$0xff]  ;;  %v1011_v30 = vld [vmem:[#allocation2 + $0x288] sm:$0xff] }
  0x34   : > { %2601 = vmatmul.msk.f32.gmra.mxu3 %vm550_vm2, %v3131_v17  ;;  %1142 = vmatpush.msra.mxu2 %v1054_v7  ;;  %v1046_v20 = vld [vmem:[#allocation2 + $0x3a0] sm:$0xff]  ;;  %v1044_v25 = vld [vmem:[#allocation2 + $0x390] sm:$0xff]  ;;  %v1053_v31 = vld [vmem:[#allocation2 + $0x3d8] sm:$0xff] }
  0x35   : > { %2586 = vmatmul.msk.f32.gmra.mxu0 %vm550_vm2, %v549_v40  ;;  %2596 = vmatmul.msk.f32.gmra.mxu2 %vm550_vm2, %v549_v40  ;;  %v1042_v29 = vld [vmem:[#allocation2 + $0x380] sm:$0xff]  ;;  %v1040_v32 = vld [vmem:[#allocation2 + $0x370] sm:$0xff]  ;;  %v1051_v34 = vld [vmem:[#allocation2 + $0x3c8] sm:$0xff] }
  0x36   : > { %746 = vmatpush.msrb.mxu1 %v515_v42  ;;  %871 = vmatpush.msra.mxu0 %v2615_v48  ;;  %v1038_v35 = vld [vmem:[#allocation2 + $0x360] sm:$0xff]  ;;  %v1007_v36 = vld [vmem:[#allocation2 + $0x268] sm:$0xff]  ;;  %v1036_v41 = vld [vmem:[#allocation2 + $0x350] sm:$0xff] }
  0x37   : > { %1143 = vmatpush.msra.mxu2 %v1052_v10  ;;  %v1005_v42 = vld [vmem:[#allocation2 + $0x258] sm:$0xff]  ;;  %v1047_v43 = vld [vmem:[#allocation2 + $0x3a8] sm:$0xff]  ;;  %v1034_v45 = vld [vmem:[#allocation2 + $0x340] sm:$0xff] }
  0x38   : > { %1114 = vmatpush.msra.mxu1 %v1026_v54  ;;  %v1003_v46 = vld [vmem:[#allocation2 + $0x248] sm:$0xff]  ;;  %v1045_v47 = vld [vmem:[#allocation2 + $0x398] sm:$0xff]  ;;  %v1032_v48 = vld [vmem:[#allocation2 + $0x330] sm:$0xff] }
  0x39   : > { %1144 = vmatpush.msra.mxu2 %v1050_v14  ;;  %v1043_v50 = vld [vmem:[#allocation2 + $0x388] sm:$0xff]  ;;  %v1060_v7 = vld [vmem:[#allocation2 + $0x410] sm:$0xf]  ;;  %v957_v10 = vld [vmem:[#allocation2 + $0xe0] sm:$0xff] }
  0x3a   : > { %2591 = vmatmul.msk.f32.gmra.mxu1 %vm550_vm2, %v549_v40  ;;  %v1031_v4 = vld [vmem:[#allocation2 + $0x328] sm:$0xff]  ;;  %2640 = vmatpush.msk.msra.mxu3 %vm559_vm0, %v1060_v7 }
  0x3b   : > { %1115 = vmatpush.msra.mxu1 %v1024_v55 }
  0x3c   : > { %2602 = vmatmul.msk.f32.gmra.mxu3 %vm550_vm2, %v3181_v33 }
  0x3d   : > { %2587 = vmatmul.msk.f32.gmra.mxu0 %vm550_vm2, %v548_v37  ;;  %2597 = vmatmul.msk.f32.gmra.mxu2 %vm550_vm2, %v548_v37 }
  0x3e   : > { %1116 = vmatpush.msra.mxu1 %v1022_v56  ;;  %v1028_v56 = vld [vmem:[#allocation2 + $0x310] sm:$0xff] }
  0x40   : > { %1117 = vmatpush.msra.mxu1 %v1020_v57  ;;  %v997_v57 = vld [vmem:[#allocation2 + $0x218] sm:$0xff] }
  0x42   : > { %2592 = vmatmul.msk.f32.gmra.mxu1 %vm550_vm2, %v548_v37  ;;  %v1049_v37 = vld [vmem:[#allocation2 + $0x3b8] sm:$0xff] }
  0x43   : > { %1118 = vmatpush.msra.mxu1 %v1018_v58  ;;  %v1039_v58 = vld [vmem:[#allocation2 + $0x368] sm:$0xff] }
  0x44   : > { %2631 = vmatmul.msk.f32.vlgmr.msrb.gmra.mxu3 %vm550_vm2, %v776_v49 }
  0x45   : > { %2604 = vmatmul.msk.f32.vlgmr.msrb.gmra.mxu0 %vm550_vm2, %v3117_v11  ;;  %2626 = vmatmul.msk.f32.vlgmr.msrb.gmra.mxu2 %vm550_vm2, %v776_v49 }
  0x46   : > { %1119 = vmatpush.msra.mxu1 %v1016_v59  ;;  %1192 = vmatpush.msrb.mxu0 %v1027_v2 }
  0x48   : > { %1120 = vmatpush.msra.mxu1 %v1014_v60  ;;  %1193 = vmatpush.msrb.mxu0 %v1025_v5 }
  0x4a   : > { %2609 = vmatmul.msk.f32.vlgmr.msrb.gmra.mxu1 %vm550_vm2, %v3117_v11  ;;  %1194 = vmatpush.msrb.mxu0 %v1023_v8  ;;  %v1021_v11 = vld [vmem:[#allocation2 + $0x2d8] sm:$0xff]  ;;  %v959_v8 = vld [vmem:[#allocation2 + $0xf0] sm:$0xff] }
  0x4b   : > { %1121 = vmatpush.msra.mxu1 %v1012_v61  ;;  %v1037_v61 = vld [vmem:[#allocation2 + $0x358] sm:$0xff]  ;;  %1282 = vmatpush.msrb.mxu3 %v959_v8 }
  0x4c   : > { %2632 = vmatmul.msk.f32.gmra.mxu3 %vm550_vm2, %v778_v51  ;;  %1195 = vmatpush.msrb.mxu0 %v1021_v11 }
  0x4d   : > { %2605 = vmatmul.msk.f32.gmra.mxu0 %vm550_vm2, %v3120_v12  ;;  %2627 = vmatmul.msk.f32.gmra.mxu2 %vm550_vm2, %v778_v51 }
  0x4e   : > { %1122 = vmatpush.msra.mxu1 %v1010_v62  ;;  %1196 = vmatpush.msrb.mxu0 %v1019_v15  ;;  %v1035_v62 = vld [vmem:[#allocation2 + $0x348] sm:$0xff] }
  0x4f   : > { %1283 = vmatpush.msrb.mxu3 %v957_v10  ;;  %v958_v10 = vld [vmem:[#allocation2 + $0xe8] sm:$0xff] }
  0x50   : > { %1123 = vmatpush.msra.mxu1 %v1008_v63  ;;  %1197 = vmatpush.msrb.mxu0 %v1017_v18  ;;  %v1061_v63 = vld [vmem:[#allocation2 + $0x418] sm:$0xf] }
  0x52   : > { %2610 = vmatmul.msk.f32.gmra.mxu1 %vm550_vm2, %v3120_v12  ;;  %1198 = vmatpush.msrb.mxu0 %v1015_v21 }
  0x53   : > { %1124 = vmatpush.msra.mxu1 %v1006_v0  ;;  %v1033_v0 = vld [vmem:[#allocation2 + $0x338] sm:$0xff] }
  0x54   : > { %2633 = vmatmul.msk.f32.gmra.mxu3 %vm550_vm2, %v780_v53  ;;  %1199 = vmatpush.msrb.mxu0 %v1013_v26 }
  0x55   : > { %2606 = vmatmul.msk.f32.gmra.mxu0 %vm550_vm2, %v3131_v17  ;;  %2628 = vmatmul.msk.f32.gmra.mxu2 %vm550_vm2, %v780_v53 }
  0x56   : > { %1125 = vmatpush.msra.mxu1 %v1004_v3  ;;  %1200 = vmatpush.msrb.mxu0 %v1011_v30  ;;  %v949_v30 = vld [vmem:[#allocation2 + $0xa0] sm:$0xff] }
  0x58   : > { %1126 = vmatpush.msra.mxu1 %v1002_v6  ;;  %v1029_v6 = vld [vmem:[#allocation2 + $0x318] sm:$0xff] }
  0x5a   : > { %2611 = vmatmul.msk.f32.gmra.mxu1 %vm550_vm2, %v3131_v17  ;;  %v1048_v17 = vld [vmem:[#allocation2 + $0x3b0] sm:$0xff] }
  0x5b   : > { %1127 = vmatpush.msra.mxu1 %v1000_v9  ;;  %1145 = vmatpush.msra.mxu2 %v1048_v17  ;;  %v3302_v9 = vld [vmem:[%s3979_s2] sm:$0x7] }
  0x5c   : > { %2634 = vmatmul.msk.f32.gmra.mxu3 %vm550_vm2, %v779_v52  ;;  %v3308_v18 = vperm.slane %v3302_v9, 0  ;;  %v3311_v21 = vperm.slane %v3302_v9, 1 }
  0x5d   : > { %2607 = vmatmul.msk.f32.gmra.mxu0 %vm550_vm2, %v3181_v33  ;;  %2629 = vmatmul.msk.f32.gmra.mxu2 %vm550_vm2, %v779_v52 }
  0x5e   : > { %1128 = vmatpush.msra.mxu1 %v998_v13  ;;  %1146 = vmatpush.msra.mxu2 %v1046_v20 }
  0x60   : > { %1129 = vmatpush.msra.mxu1 %v996_v16  ;;  %1147 = vmatpush.msra.mxu2 %v1044_v25 }
  0x62   : > { %2612 = vmatmul.msk.f32.gmra.mxu1 %vm550_vm2, %v3181_v33  ;;  %1148 = vmatpush.msra.mxu2 %v1042_v29  ;;  %v1009_v33 = vld [vmem:[#allocation2 + $0x278] sm:$0xff] }
  0x63   : > { %1218 = vmatpush.msrb.mxu1 %v1059_v19  ;;  %1201 = vmatpush.msrb.mxu0 %v1009_v33  ;;  %v955_v19 = vld [vmem:[#allocation2 + $0xd0] sm:$0xff]  ;;  %v993_v33 = vld [vmem:[#allocation2 + $0x200] sm:$0xf] }
  0x64   : > { %1149 = vmatpush.msra.mxu2 %v1040_v32  ;;  %1284 = vmatpush.msrb.mxu3 %v955_v19 }
  0x65   : > { %2636 = vmatmul.msk.f32.vlgmr.msra.gmra.mxu0 %vm550_vm2, %v776_v49  ;;  %1219 = vmatpush.msrb.mxu1 %v1057_v22  ;;  %v1001_v49 = vld [vmem:[#allocation2 + $0x238] sm:$0xff]  ;;  %v953_v22 = vld [vmem:[#allocation2 + $0xc0] sm:$0xff] }
  0x66   : > { %1150 = vmatpush.msra.mxu2 %v1038_v35  ;;  %1202 = vmatpush.msrb.mxu0 %v1007_v36 }
  0x67   : > { %1220 = vmatpush.msrb.mxu1 %v1055_v28  ;;  %1285 = vmatpush.msrb.mxu3 %v953_v22  ;;  %v935_v22 = vld [vmem:[#allocation2 + $0x30] sm:$0xff] }
  0x68   : > { %1151 = vmatpush.msra.mxu2 %v1036_v41  ;;  %1203 = vmatpush.msrb.mxu0 %v1005_v42  ;;  %v945_v42 = vld [vmem:[#allocation2 + $0x80] sm:$0xff] }
  0x69   : > { %1221 = vmatpush.msrb.mxu1 %v1053_v31 }
  0x6a   : > { %1152 = vmatpush.msra.mxu2 %v1034_v45  ;;  %1204 = vmatpush.msrb.mxu0 %v1003_v46 }
  0x6b   : > { %1222 = vmatpush.msrb.mxu1 %v1051_v34 }
  0x6c   : > { %1153 = vmatpush.msra.mxu2 %v1032_v48  ;;  %1205 = vmatpush.msrb.mxu0 %v1001_v49  ;;  %v943_v48 = vld [vmem:[#allocation2 + $0x70] sm:$0xff] }
  0x6d   : > { %2637 = vmatmul.msk.f32.gmra.mxu0 %vm550_vm2, %v778_v51  ;;  %1223 = vmatpush.msrb.mxu1 %v1049_v37  ;;  %v1030_v51 = vld [vmem:[#allocation2 + $0x320] sm:$0xff] }
  0x6e   : > { %1154 = vmatpush.msra.mxu2 %v1030_v51 }
  0x6f   : > { %1224 = vmatpush.msrb.mxu1 %v1047_v43 }
  0x70   : > { %1155 = vmatpush.msra.mxu2 %v1028_v56  ;;  %v941_v56 = vld [vmem:[#allocation2 + $0x60] sm:$0xff] }
  0x71   : > { %1225 = vmatpush.msrb.mxu1 %v1045_v47 }
  0x72   : > { %2644 = vmatpush.msk.msrb.mxu2 %vm559_vm0, %v1061_v63 }
  0x73   : > { %1226 = vmatpush.msrb.mxu1 %v1043_v50 }
  0x75   : > { %2638 = vmatmul.msk.f32.gmra.mxu0 %vm550_vm2, %v780_v53  ;;  %v1041_v53 = vld [vmem:[#allocation2 + $0x378] sm:$0xff] }
  0x76   : > { %1227 = vmatpush.msrb.mxu1 %v1041_v53 }
  0x78   : > { %1228 = vmatpush.msrb.mxu1 %v1039_v58 }
  0x7a   : > { %1229 = vmatpush.msrb.mxu1 %v1037_v61 }
  0x7c   : > { %1230 = vmatpush.msrb.mxu1 %v1035_v62 }
  0x7d   : > { %2639 = vmatmul.msk.f32.gmra.mxu0 %vm550_vm2, %v779_v52  ;;  %v999_v52 = vld [vmem:[#allocation2 + $0x228] sm:$0xff] }
  0x7e   : > { %1206 = vmatpush.msrb.mxu0 %v999_v52  ;;  %1231 = vmatpush.msrb.mxu1 %v1033_v0 }
  0x80   : > { %1207 = vmatpush.msrb.mxu0 %v997_v57  ;;  %1232 = vmatpush.msrb.mxu1 %v1031_v4  ;;  %v960_v4 = vld [vmem:[#allocation2 + $0xf8] sm:$0xff] }
  0x82   : > { %1233 = vmatpush.msrb.mxu1 %v1029_v6  ;;  %2648 = vmatpush.msk.msra.mxu0 %vm559_vm0, %v993_v33  ;;  %v939_v6 = vld [vmem:[#allocation2 + $0x50] sm:$0xff] }
  0xa2   : > { %v3271_v12 = vpop.f32.mrf.mxu0 }
  0xa7   : > { %v3275_v24 = vpop.f32.mrf.mxu3  ;;  %v3279_v38 = vpop.f32.mrf.mxu1 }
  0xa8   : > { %v3273_v23 = vpop.f32.mrf.mxu2  ;;  %v691_v11 = vadd.f32 %v3275_v24, %v3271_v12  ;;  %v951_v24 = vld [vmem:[#allocation2 + $0xb0] sm:$0xff] }
  0xa9   : > { %1286 = vmatpush.msrb.mxu3 %v951_v24 }
  0xaa   : > { %v3277_v27 = vpop.f32.mrf.mxu0 }
  0xab   : > { %1287 = vmatpush.msrb.mxu3 %v949_v30 }
  0xaf   : > { %v3283_v40 = vpop.f32.mrf.mxu3  ;;  %v618_v60 = vpop.f32.mrf.mxu1 }
  0xb0   : > { %v3281_v39 = vpop.f32.mrf.mxu2  ;;  %v694_v26 = vadd.f32 %v3283_v40, %v3277_v27 }
  0xb2   : > { %v3285_v44 = vpop.f32.mrf.mxu0 }
  0xb7   : > { %v3289_v55 = vpop.f32.mrf.mxu3  ;;  %v621_v5 = vpop.f32.mrf.mxu1 }
  0xb8   : > { %v3287_v54 = vpop.f32.mrf.mxu2  ;;  %v697_v46 = vadd.f32 %v3289_v55, %v3285_v44 }
  0xba   : > { %v3291_v59 = vpop.f32.mrf.mxu0 }
  0xbf   : > { %v3296_v2 = vpop.f32.mrf.mxu3  ;;  %v3313_v25 = vpop.f32.mrf.mxu1 }
  0xc0   : > { %v3294_v1 = vpop.f32.mrf.mxu2  ;;  %v700_v19 = vadd.f32 %v3296_v2, %v3291_v59 }
  0xc2   : > { %v719_v3 = vpop.f32.mrf.mxu0 }
  0xc3   : > { %v720_v15 = vadd.f32 %v719_v3, %v3279_v38  ;;  %v947_v38 = vld [vmem:[#allocation2 + $0x90] sm:$0xff] }
  0xc4   : > { %1288 = vmatpush.msrb.mxu3 %v947_v38 }
  0xc6   : > { %1289 = vmatpush.msrb.mxu3 %v945_v42 }
  0xc7   : > { %v844_v14 = vpop.f32.mrf.mxu3  ;;  %v748_v50 = vpop.f32.mrf.mxu1 }
  0xc8   : > { %v815_v13 = vpop.f32.mrf.mxu2  ;;  %v886_v20 = vadd.f32 %v844_v14, %v720_v15  ;;  %1290 = vmatpush.msrb.mxu3 %v943_v48  ;;  %v937_v14 = vld [vmem:[#allocation2 + $0x40] sm:$0xff]  ;;  %v749_v38 = vadd.f32 %v748_v50, %v3273_v23  ;;  %v931_v48 = vld [vmem:[#allocation2 + $0x10] sm:$0xff]  ;;  %v3372_v23 = vperm.slane %v3302_v9, 2 }
  0xc9   : > { %v885_v17 = vadd.f32 %v815_v13, %v691_v11  ;;  %v987_v13 = vld [vmem:[#allocation2 + $0x1d0] sm:$0xff] }
  0xca   : > { %v722_v16 = vpop.f32.mrf.mxu0  ;;  %v906_v28 = vadd.f32 %v3311_v21, %v886_v20  ;;  %1291 = vmatpush.msrb.mxu3 %v941_v56  ;;  %v985_v20 = vld [vmem:[#allocation2 + $0x1c0] sm:$0xff]  ;;  %v979_v50 = vld [vmem:[#allocation2 + $0x190] sm:$0xff] }
  0xcb   : > { %v905_v12 = vadd.f32 %v3308_v18, %v885_v17  ;;  %v723_v29 = vadd.f32 %v722_v16, %v618_v60  ;;  %v991_v60 = vld [vmem:[#allocation2 + $0x1f0] sm:$0xff]  ;;  %v956_v17 = vld [vmem:[#allocation2 + $0xd8] sm:$0xff]  ;;  %v977_v56 = vld [vmem:[#allocation2 + $0x180] sm:$0xff] }
  0xcc   : > { %v3322_v41 = vmax.f32 %v906_v28, 0.0  ;;  %1292 = vmatpush.msrb.mxu3 %v939_v6 }
  0xcd   : > { %v3320_v37 = vmax.f32 %v905_v12, 0.0 }
  0xce   : > { %v1077_v52 = vrot.slane %v3322_v41, 1  ;;  %1293 = vmatpush.msrb.mxu3 %v937_v14  ;;  %v944_v14 = vld [vmem:[#allocation2 + $0x78] sm:$0xff] }
  0xcf   : > { %v847_v32 = vpop.f32.mrf.mxu3  ;;  %v1074_v47 = vrot.slane %v3320_v37, 1  ;;  %v1505_v61 = vrot.slane %v3320_v37, 2 }
  0xd0   : > { %v818_v31 = vpop.f32.mrf.mxu2  ;;  %v889_v35 = vadd.f32 %v847_v32, %v723_v29  ;;  %1294 = vmatpush.msrb.mxu3 %v935_v22  ;;  %v751_v32 = vpop.f32.mrf.mxu1 }
  0xd1   : > { %v888_v34 = vadd.f32 %v818_v31, %v694_v26  ;;  %v983_v31 = vld [vmem:[#allocation2 + $0x1b0] sm:$0xff] }
  0xd2   : > { %v725_v36 = vpop.f32.mrf.mxu0  ;;  %v909_v40 = vadd.f32 %v3311_v21, %v889_v35  ;;  %v954_v35 = vld [vmem:[#allocation2 + $0xc8] sm:$0xff] }
  0xd3   : > { %v908_v27 = vadd.f32 %v3308_v18, %v888_v34  ;;  %v726_v49 = vadd.f32 %v725_v36, %v621_v5  ;;  %v989_v5 = vld [vmem:[#allocation2 + $0x1e0] sm:$0xff] }
  0xd4   : > { %v3328_v45 = vmax.f32 %v909_v40, 0.0  ;;  %v933_v36 = vld [vmem:[#allocation2 + $0x20] sm:$0xff]  ;;  %v994_v40 = vld [vmem:[#allocation2 + $0x208] sm:$0xf] }
  0xd5   : > { %v3326_v43 = vmax.f32 %v908_v27, 0.0  ;;  %v981_v27 = vld [vmem:[#allocation2 + $0x1a0] sm:$0xff]  ;;  %1295 = vmatpush.msrb.mxu3 %v933_v36 }
  0xd6   : > { %v1078_v53 = vrot.slane %v3328_v45, 1 }
  0xd7   : > { %v1075_v51 = vrot.slane %v3326_v43, 1  ;;  %v850_v58 = vpop.f32.mrf.mxu3  ;;  %v1506_v44 = vrot.slane %v3326_v43, 2  ;;  %1296 = vmatpush.msrb.mxu3 %v931_v48  ;;  %v988_v48 = vld [vmem:[#allocation2 + $0x1d8] sm:$0xff] }
  0xd8   : > { %v821_v57 = vpop.f32.mrf.mxu2  ;;  %v892_v62 = vadd.f32 %v850_v58, %v726_v49  ;;  %v3340_v3 = vsel %vm542_vm1, %v1077_v52, %v1078_v53  ;;  %v754_v6 = vpop.f32.mrf.mxu1 }
  0xd9   : > { %v891_v55 = vadd.f32 %v821_v57, %v697_v46  ;;  %v1076_v0 = vsel %vm542_vm1, %v1074_v47, %v1075_v51  ;;  %1156 = vmatmul.f32.vlgmr.msra.gmra.mxu2 %v3340_v3  ;;  %v3346_v11 = vsel %vm773_vm3, %v1505_v61, %v1506_v44  ;;  %v952_v47 = vld [vmem:[#allocation2 + $0xb8] sm:$0xff] }
  0xda   : > { %v728_v63 = vpop.f32.mrf.mxu0  ;;  %1130 = vmatmul.f32.vlgmr.msra.gmra.mxu1 %v1076_v0  ;;  %v912_v8 = vadd.f32 %v3311_v21, %v892_v62  ;;  %1208 = vmatmul.f32.vlgmr.msrb.gmra.mxu0 %v1076_v0  ;;  %v948_v0 = vld [vmem:[#allocation2 + $0x98] sm:$0xff] }
  0xdb   : > { %v911_v7 = vadd.f32 %v3308_v18, %v891_v55  ;;  %1308 = vmatpush.msra.mxu2 %v991_v60  ;;  %1360 = vmatpush.msra.mxu1 %v960_v4  ;;  %v729_v12 = vadd.f32 %v728_v63, %v3313_v25  ;;  %v752_v60 = vadd.f32 %v751_v32, %v3281_v39  ;;  %v973_v39 = vld [vmem:[#allocation2 + $0x160] sm:$0xff]  ;;  %v1470_v32 = vld [vmem:[#allocation2 + $0x518] sm:$0xff] }
  0xdc   : > { %v3350_v16 = vmax.f32 %v912_v8, 0.0  ;;  %2652 = vmatpush.msk.msrb.mxu0 %vm559_vm0, %v994_v40 }
  0xdd   : > { %v3348_v15 = vmax.f32 %v911_v7, 0.0  ;;  %1309 = vmatpush.msra.mxu2 %v989_v5  ;;  %1361 = vmatpush.msra.mxu1 %v958_v10  ;;  %v946_v7 = vld [vmem:[#allocation2 + $0x88] sm:$0xff] }
  0xde   : > { %v1085_v26 = vrot.slane %v3350_v16, 1 }
  0xdf   : > { %v1083_v24 = vrot.slane %v3348_v15, 1  ;;  %1310 = vmatpush.msra.mxu2 %v987_v13  ;;  %v1514_v28 = vrot.slane %v3348_v15, 2  ;;  %v853_v30 = vpop.f32.mrf.mxu3  ;;  %1362 = vmatpush.msra.mxu1 %v956_v17  ;;  %v971_v13 = vld [vmem:[#allocation2 + $0x150] sm:$0xff] }
  0xe0   : > { %v824_v29 = vpop.f32.mrf.mxu2  ;;  %v895_v2 = vadd.f32 %v853_v30, %v729_v12  ;;  %v3360_v25 = vsel %vm542_vm1, %v1078_v53, %v1085_v26  ;;  %v929_v53 = vld [vmem:[#allocation2] sm:$0xff]  ;;  %v757_v36 = vpop.f32.mrf.mxu1 }
  0xe1   : > { %v894_v59 = vadd.f32 %v824_v29, %v700_v19  ;;  %v1084_v34 = vsel %vm542_vm1, %v1075_v51, %v1083_v24  ;;  %1311 = vmatpush.msra.mxu2 %v985_v20  ;;  %v3369_v49 = vsel %vm773_vm3, %v1506_v44, %v1514_v28  ;;  %1363 = vmatpush.msra.mxu1 %v954_v35  ;;  %v975_v44 = vld [vmem:[#allocation2 + $0x170] sm:$0xff]  ;;  %v969_v19 = vld [vmem:[#allocation2 + $0x140] sm:$0xff]  ;;  %v942_v29 = vld [vmem:[#allocation2 + $0x68] sm:$0xff] }
  0xe2   : > { %v873_v33 = vpop.f32.mrf.mxu0  ;;  %1133 = vmatmul.f32.gmra.mxu1 %v1084_v34  ;;  %1159 = vmatmul.f32.gmra.mxu2 %v3360_v25  ;;  %v3366_v46 = vadd.f32 %v3311_v21, %v895_v2  ;;  %v950_v21 = vld [vmem:[#allocation2 + $0xa8] sm:$0xff]  ;;  %v755_v20 = vadd.f32 %v754_v6, %v3287_v54  ;;  %v967_v54 = vld [vmem:[#allocation2 + $0x130] sm:$0xff]  ;;  %v940_v2 = vld [vmem:[#allocation2 + $0x58] sm:$0xff] }
  0xe3   : > { %v914_v42 = vadd.f32 %v3308_v18, %v894_v59  ;;  %1211 = vmatmul.f32.gmra.mxu0 %v1084_v34  ;;  %1312 = vmatpush.msra.mxu2 %v983_v31  ;;  %v887_v51 = vadd.f32 %v873_v33, %v749_v38  ;;  %v992_v33 = vld [vmem:[#allocation2 + $0x1f8] sm:$0xff]  ;;  %v1468_v35 = vld [vmem:[#allocation2 + $0x508] sm:$0xff] }
  0xe4   : > { %v927_v18 = vmax.f32 %v3366_v46, 0.0  ;;  %1364 = vmatpush.msra.mxu1 %v952_v47  ;;  %1297 = vmatpush.msrb.mxu3 %v929_v53  ;;  %v938_v38 = vld [vmem:[#allocation2 + $0x48] sm:$0xff]  ;;  %v1466_v47 = vld [vmem:[#allocation2 + $0x4f8] sm:$0xff] }
  0xe5   : > { %v926_v52 = vmax.f32 %v914_v42, 0.0  ;;  %1313 = vmatpush.msra.mxu2 %v981_v27  ;;  %v907_v61 = vadd.f32 %v3372_v23, %v887_v51  ;;  %v990_v27 = vld [vmem:[#allocation2 + $0x1e8] sm:$0xff]  ;;  %v963_v42 = vld [vmem:[#allocation2 + $0x110] sm:$0xff]  ;;  %v758_v51 = vadd.f32 %v757_v36, %v3294_v1  ;;  %v936_v53 = vld [vmem:[#allocation2 + $0x38] sm:$0xff] }
  0xe6   : > { %v1091_v58 = vrot.slane %v927_v18, 1  ;;  %1365 = vmatpush.msra.mxu1 %v950_v21  ;;  %v1460_v6 = vld [vmem:[#allocation2 + $0x4c8] sm:$0xff]  ;;  %v976_v36 = vld [vmem:[#allocation2 + $0x178] sm:$0xff] }
  0xe7   : > { %v1089_v57 = vrot.slane %v926_v52, 1  ;;  %1314 = vmatpush.msra.mxu2 %v979_v50  ;;  %v1520_v9 = vrot.slane %v926_v52, 2  ;;  %v3388_v8 = vmax.f32 %v907_v61, 0.0  ;;  %v1469_v61 = vld [vmem:[#allocation2 + $0x510] sm:$0xff]  ;;  %v1474_v46 = vld [vmem:[#allocation2 + $0x538] sm:$0xff] }
  0xe8   : > { %v3382_v63 = vsel %vm542_vm1, %v1085_v26, %v1091_v58  ;;  %1366 = vmatpush.msra.mxu1 %v948_v0  ;;  %v961_v58 = vld [vmem:[#allocation2 + $0x100] sm:$0xff] }
  0xe9   : > { %v1090_v62 = vsel %vm542_vm1, %v1083_v24, %v1089_v57  ;;  %1315 = vmatpush.msra.mxu2 %v977_v56  ;;  %v3385_v4 = vsel %vm773_vm3, %v1514_v28, %v1520_v9  ;;  %v1080_v22 = vrot.slane %v3388_v8, 1  ;;  %v1511_v24 = vrot.slane %v3388_v8, 2  ;;  %v1464_v9 = vld [vmem:[#allocation2 + $0x4e8] sm:$0xff]  ;;  %v1467_v0 = vld [vmem:[#allocation2 + $0x500] sm:$0xff] }
  0xea   : > { %v876_v55 = vpop.f32.mrf.mxu0  ;;  %1136 = vmatmul.f32.gmra.mxu1 %v1090_v62  ;;  %1162 = vmatmul.f32.gmra.mxu2 %v3382_v63 }
  0xeb   : > { %v890_v5 = vadd.f32 %v876_v55, %v752_v60  ;;  %1214 = vmatmul.f32.gmra.mxu0 %v1090_v62  ;;  %1316 = vmatpush.msra.mxu2 %v975_v44  ;;  %v934_v60 = vld [vmem:[#allocation2 + $0x28] sm:$0xff]  ;;  %v1462_v55 = vld [vmem:[#allocation2 + $0x4d8] sm:$0xff] }
  0xec   : > { %1367 = vmatpush.msra.mxu1 %v946_v7  ;;  %v932_v62 = vld [vmem:[#allocation2 + $0x18] sm:$0xff]  ;;  %v1465_v7 = vld [vmem:[#allocation2 + $0x4f0] sm:$0xff] }
  0xed   : > { %v910_v10 = vadd.f32 %v3372_v23, %v890_v5  ;;  %1317 = vmatpush.msra.mxu2 %v973_v39  ;;  %v984_v39 = vld [vmem:[#allocation2 + $0x1b8] sm:$0xff] }
  0xee   : > { %1368 = vmatpush.msra.mxu1 %v944_v14  ;;  %v1501_v14 = vld [vmem:[#allocation2 + $0x610] sm:$0xff] }
  0xef   : > { %v3391_v17 = vmax.f32 %v910_v10, 0.0  ;;  %1318 = vmatpush.msra.mxu2 %v971_v13 }
  0xf0   : > { %1369 = vmatpush.msra.mxu1 %v942_v29  ;;  %v1497_v29 = vld [vmem:[#allocation2 + $0x5f0] sm:$0xff] }
  0xf1   : > { %v1081_v12 = vrot.slane %v3391_v17, 1  ;;  %v1512_v26 = vrot.slane %v3391_v17, 2  ;;  %1319 = vmatpush.msra.mxu2 %v969_v19 }
  0xf2   : > { %v879_v28 = vpop.f32.mrf.mxu0  ;;  %1234 = vmatmul.f32.vlgmr.msrb.gmra.mxu1 %v3340_v3  ;;  %v965_v3 = vld [vmem:[#allocation2 + $0x120] sm:$0xff] }
  0xf3   : > { %v893_v30 = vadd.f32 %v879_v28, %v755_v20  ;;  %v1082_v31 = vsel %vm542_vm1, %v1080_v22, %v1081_v12  ;;  %v3401_v59 = vsel %vm773_vm3, %v1511_v24, %v1512_v26  ;;  %2649 = vmatmul.msk.f32.vlgmr.msra.gmra.mxu0 %vm1101_vm4, %v3388_v8  ;;  %1320 = vmatpush.msra.mxu2 %v967_v54  ;;  %v982_v20 = vld [vmem:[#allocation2 + $0x1a8] sm:$0xff]  ;;  %v1499_v24 = vld [vmem:[#allocation2 + $0x600] sm:$0xff]  ;;  %v980_v28 = vld [vmem:[#allocation2 + $0x198] sm:$0xff] }
  0xf4   : > { %2641 = vmatmul.msk.f32.vlgmr.msra.gmra.mxu3 %vm1101_vm4, %v1082_v31  ;;  %2645 = vmatmul.msk.f32.vlgmr.msrb.gmra.mxu2 %vm1101_vm4, %v1082_v31  ;;  %v978_v31 = vld [vmem:[#allocation2 + $0x188] sm:$0xff]  ;;  %v1459_v54 = vld [vmem:[#allocation2 + $0x4c0] sm:$0xff] }
  0xf5   : > { %v913_v34 = vadd.f32 %v3372_v23, %v893_v30  ;;  %1622 = vmatpush.msra.mxu0 %v1470_v32  ;;  %1370 = vmatpush.msra.mxu1 %v940_v2  ;;  %v1456_v30 = vld [vmem:[#allocation2 + $0x4a8] sm:$0xff]  ;;  %v1495_v32 = vld [vmem:[#allocation2 + $0x5e0] sm:$0xff]  ;;  %v1457_v2 = vld [vmem:[#allocation2 + $0x4b0] sm:$0xff] }
  0xf6   : > { %1386 = vmatpush.msra.mxu3 %v992_v33  ;;  %1321 = vmatpush.msra.mxu2 %v965_v3  ;;  %v1493_v33 = vld [vmem:[#allocation2 + $0x5d0] sm:$0xff]  ;;  %v1491_v3 = vld [vmem:[#allocation2 + $0x5c0] sm:$0xff] }
  0xf7   : > { %v3408_v40 = vmax.f32 %v913_v34, 0.0  ;;  %1623 = vmatpush.msra.mxu0 %v1468_v35  ;;  %1371 = vmatpush.msra.mxu1 %v938_v38  ;;  %v1455_v34 = vld [vmem:[#allocation2 + $0x4a0] sm:$0xff]  ;;  %v1454_v35 = vld [vmem:[#allocation2 + $0x498] sm:$0xff]  ;;  %v1453_v38 = vld [vmem:[#allocation2 + $0x490] sm:$0xff] }
  0xf8   : > { %1387 = vmatpush.msra.mxu3 %v990_v27  ;;  %1322 = vmatpush.msra.mxu2 %v963_v42  ;;  %v1489_v27 = vld [vmem:[#allocation2 + $0x5b0] sm:$0xff]  ;;  %v1452_v42 = vld [vmem:[#allocation2 + $0x488] sm:$0xff] }
  0xf9   : > { %v1087_v50 = vrot.slane %v3408_v40, 1  ;;  %v1518_v52 = vrot.slane %v3408_v40, 2  ;;  %1624 = vmatpush.msra.mxu0 %v1466_v47  ;;  %1372 = vmatpush.msra.mxu1 %v936_v53  ;;  %v974_v47 = vld [vmem:[#allocation2 + $0x168] sm:$0xff]  ;;  %v972_v53 = vld [vmem:[#allocation2 + $0x158] sm:$0xff] }
  0xfa   : > { %v882_v21 = vpop.f32.mrf.mxu0  ;;  %1237 = vmatmul.f32.gmra.mxu1 %v3360_v25  ;;  %1388 = vmatpush.msra.mxu3 %v988_v48  ;;  %v986_v25 = vld [vmem:[#allocation2 + $0x1c8] sm:$0xff]  ;;  %v1451_v48 = vld [vmem:[#allocation2 + $0x480] sm:$0xff] }
  0xfb   : > { %v896_v56 = vadd.f32 %v882_v21, %v758_v51  ;;  %v1088_v57 = vsel %vm542_vm1, %v1081_v12, %v1087_v50  ;;  %v3416_v1 = vsel %vm773_vm3, %v1512_v26, %v1518_v52  ;;  %2650 = vmatmul.msk.f32.gmra.mxu0 %vm1101_vm4, %v3391_v17  ;;  %1323 = vmatpush.msra.mxu2 %v961_v58  ;;  %v1463_v12 = vld [vmem:[#allocation2 + $0x4e0] sm:$0xff]  ;;  %v1458_v26 = vld [vmem:[#allocation2 + $0x4b8] sm:$0xff]  ;;  %v1448_v58 = vld [vmem:[#allocation2 + $0x468] sm:$0xff] }
  0xfc   : > { %2642 = vmatmul.msk.f32.gmra.mxu3 %vm1101_vm4, %v1088_v57  ;;  %2646 = vmatmul.msk.f32.gmra.mxu2 %vm1101_vm4, %v1088_v57  ;;  %v1487_v51 = vld [vmem:[#allocation2 + $0x5a0] sm:$0xff]  ;;  %v1450_v21 = vld [vmem:[#allocation2 + $0x478] sm:$0xff]  ;;  %v1481_v57 = vld [vmem:[#allocation2 + $0x570] sm:$0xff] }
  0xfd   : > { %v916_v44 = vadd.f32 %v3372_v23, %v896_v56  ;;  %1625 = vmatpush.msra.mxu0 %v1464_v9  ;;  %1373 = vmatpush.msra.mxu1 %v934_v60  ;;  %v930_v23 = vld [vmem:[#allocation2 + $0x8] sm:$0xff]  ;;  %v1445_v56 = vld [vmem:[#allocation2 + $0x450] sm:$0xff]  ;;  %v1443_v60 = vld [vmem:[#allocation2 + $0x440] sm:$0xff] }
  0xfe   : > { %1544 = vmatpush.msrb.mxu2 %v1469_v61  ;;  %1389 = vmatpush.msra.mxu3 %v986_v25  ;;  %v970_v9 = vld [vmem:[#allocation2 + $0x148] sm:$0xff]  ;;  %v1441_v61 = vld [vmem:[#allocation2 + $0x430] sm:$0xff]  ;;  %v968_v25 = vld [vmem:[#allocation2 + $0x138] sm:$0xff] }
  0xff   : > { %v928_v5 = vmax.f32 %v916_v44, 0.0  ;;  %1626 = vmatpush.msra.mxu0 %v1462_v55  ;;  %1374 = vmatpush.msra.mxu1 %v932_v62  ;;  %v1477_v44 = vld [vmem:[#allocation2 + $0x550] sm:$0xff]  ;;  %v1439_v55 = vld [vmem:[#allocation2 + $0x420] sm:$0xff] }
 0x100   : > { %1545 = vmatpush.msrb.mxu2 %v1467_v0  ;;  %1390 = vmatpush.msra.mxu3 %v984_v39  ;;  %v1475_v62 = vld [vmem:[#allocation2 + $0x540] sm:$0xff]  ;;  %v1444_v0 = vld [vmem:[#allocation2 + $0x448] sm:$0xff] }
 0x101   : > { %v1093_v10 = vrot.slane %v928_v5, 1  ;;  %v1524_v13 = vrot.slane %v928_v5, 2  ;;  %1627 = vmatpush.msra.mxu0 %v1460_v6  ;;  %1375 = vmatpush.msra.mxu1 %v930_v23  ;;  %v1502_v5 = vld [vmem:[#allocation2 + $0x618] sm:$0xff]  ;;  %v966_v39 = vld [vmem:[#allocation2 + $0x128] sm:$0xff]  ;;  %v1473_v6 = vld [vmem:[#allocation2 + $0x530] sm:$0xff]  ;;  %v1509_v23 = vrot.slane %v3328_v45, 2 }
 0x102   : > { %1240 = vmatmul.f32.gmra.mxu1 %v3382_v63  ;;  %1546 = vmatpush.msrb.mxu2 %v1465_v7  ;;  %v1461_v63 = vld [vmem:[#allocation2 + $0x4d0] sm:$0xff]  ;;  %v1442_v7 = vld [vmem:[#allocation2 + $0x438] sm:$0xff] }
 0x103   : > { %v1094_v19 = vsel %vm542_vm1, %v1087_v50, %v1093_v10  ;;  %v3426_v22 = vsel %vm773_vm3, %v1518_v52, %v1524_v13  ;;  %2651 = vmatmul.msk.f32.gmra.mxu0 %vm1101_vm4, %v3408_v40  ;;  %1570 = vmatpush.msrb.mxu1 %v1501_v14  ;;  %v1485_v50 = vld [vmem:[#allocation2 + $0x590] sm:$0xff]  ;;  %v1483_v52 = vld [vmem:[#allocation2 + $0x580] sm:$0xff]  ;;  %v1500_v10 = vld [vmem:[#allocation2 + $0x608] sm:$0xff] }
 0x104   : > { %2643 = vmatmul.msk.f32.gmra.mxu3 %vm1101_vm4, %v1094_v19  ;;  %2647 = vmatmul.msk.f32.gmra.mxu2 %vm1101_vm4, %v1094_v19  ;;  %v1471_v13 = vld [vmem:[#allocation2 + $0x520] sm:$0xff]  ;;  %v1498_v14 = vld [vmem:[#allocation2 + $0x5f8] sm:$0xff]  ;;  %v1508_v19 = vrot.slane %v3322_v41, 2 }
 0x105   : > { %1391 = vmatpush.msra.mxu3 %v982_v20  ;;  %1547 = vmatpush.msrb.mxu2 %v1463_v12  ;;  %v962_v20 = vld [vmem:[#allocation2 + $0x108] sm:$0xff] }
 0x106   : > { %1571 = vmatpush.msrb.mxu1 %v1499_v24  ;;  %1628 = vmatpush.msra.mxu0 %v1458_v26  ;;  %v1496_v12 = vld [vmem:[#allocation2 + $0x5e8] sm:$0xff]  ;;  %v1510_v24 = vsel %vm773_vm3, %v1508_v19, %v1509_v23  ;;  %v1494_v26 = vld [vmem:[#allocation2 + $0x5d8] sm:$0xff] }
 0x107   : > { %1392 = vmatpush.msra.mxu3 %v980_v28  ;;  %1548 = vmatpush.msrb.mxu2 %v1461_v63  ;;  %v1503_v28 = vld [vmem:[#allocation2 + $0x620] sm:$0xf]  ;;  %v1492_v63 = vld [vmem:[#allocation2 + $0x5c8] sm:$0xff] }
 0x108   : > { %1572 = vmatpush.msrb.mxu1 %v1497_v29  ;;  %1629 = vmatpush.msra.mxu0 %v1456_v30  ;;  %v1516_v29 = vrot.slane %v3350_v16, 2  ;;  %v1490_v30 = vld [vmem:[#allocation2 + $0x5b8] sm:$0xff] }
 0x109   : > { %1393 = vmatpush.msra.mxu3 %v978_v31  ;;  %1549 = vmatpush.msrb.mxu2 %v1459_v54  ;;  %v1488_v31 = vld [vmem:[#allocation2 + $0x5a8] sm:$0xff] }
 0x10a   : > { %1573 = vmatpush.msrb.mxu1 %v1495_v32  ;;  %1630 = vmatpush.msra.mxu0 %v1454_v35  ;;  %v1517_v54 = vsel %vm773_vm3, %v1509_v23, %v1516_v29  ;;  %v1486_v32 = vld [vmem:[#allocation2 + $0x598] sm:$0xff] }
 0x10b   : > { %1376 = vmatmul.f32.vlgmr.msra.gmra.mxu1 %v3320_v37  ;;  %2653 = vmatmul.msk.f32.vlgmr.msrb.gmra.mxu0 %vm1101_vm4, %v3388_v8  ;;  %v1449_v8 = vld [vmem:[#allocation2 + $0x470] sm:$0xff] }
 0x10c   : > { %1550 = vmatpush.msrb.mxu2 %v1457_v2  ;;  %1574 = vmatpush.msrb.mxu1 %v1493_v33  ;;  %v1522_v2 = vrot.slane %v927_v18, 2  ;;  %v1482_v33 = vld [vmem:[#allocation2 + $0x578] sm:$0xff]  ;;  %v1472_v18 = vld [vmem:[#allocation2 + $0x528] sm:$0xff] }
 0x10d   : > { %1298 = vmatmul.f32.vlgmr.msrb.gmra.mxu3 %v3320_v37  ;;  %1324 = vmatmul.f32.vlgmr.msra.gmra.mxu2 %v3322_v41  ;;  %v1447_v37 = vld [vmem:[#allocation2 + $0x460] sm:$0xff] }
 0x10e   : > { %1551 = vmatpush.msrb.mxu2 %v1455_v34  ;;  %1575 = vmatpush.msrb.mxu1 %v1491_v3  ;;  %v1480_v34 = vld [vmem:[#allocation2 + $0x568] sm:$0xff]  ;;  %v1523_v3 = vsel %vm773_vm3, %v1516_v29, %v1522_v2 }
 0x10f   : > { %1394 = vmatpush.msra.mxu3 %v976_v36  ;;  %1631 = vmatpush.msra.mxu0 %v1452_v42 }
 0x110   : > { %1552 = vmatpush.msrb.mxu2 %v1453_v38  ;;  %1576 = vmatpush.msrb.mxu1 %v1489_v27 }
 0x111   : > { %1395 = vmatpush.msra.mxu3 %v974_v47  ;;  %1632 = vmatpush.msra.mxu0 %v1450_v21 }
 0x112   : > { %1553 = vmatpush.msrb.mxu2 %v1451_v48  ;;  %1577 = vmatpush.msrb.mxu1 %v1487_v51 }
 0x113   : > { %1379 = vmatmul.f32.gmra.mxu1 %v3326_v43  ;;  %2654 = vmatmul.msk.f32.gmra.mxu0 %vm1101_vm4, %v3391_v17  ;;  %v1479_v17 = vld [vmem:[#allocation2 + $0x560] sm:$0xff] }
 0x114   : > { %1554 = vmatpush.msrb.mxu2 %v1449_v8  ;;  %1578 = vmatpush.msrb.mxu1 %v1485_v50 }
 0x115   : > { %1301 = vmatmul.f32.gmra.mxu3 %v3326_v43  ;;  %1327 = vmatmul.f32.gmra.mxu2 %v3328_v45  ;;  %v1446_v43 = vld [vmem:[#allocation2 + $0x458] sm:$0xff] }
 0x116   : > { %1555 = vmatpush.msrb.mxu2 %v1447_v37  ;;  %1579 = vmatpush.msrb.mxu1 %v1483_v52 }
 0x117   : > { %1396 = vmatpush.msra.mxu3 %v972_v53  ;;  %1633 = vmatpush.msra.mxu0 %v1448_v58 }
 0x118   : > { %1556 = vmatpush.msrb.mxu2 %v1445_v56  ;;  %1580 = vmatpush.msrb.mxu1 %v1481_v57 }
 0x119   : > { %1397 = vmatpush.msra.mxu3 %v970_v9  ;;  %1634 = vmatpush.msra.mxu0 %v1446_v43 }
 0x11a   : > { %1557 = vmatpush.msrb.mxu2 %v1443_v60  ;;  %1581 = vmatpush.msrb.mxu1 %v1479_v17 }
 0x11b   : > { %1382 = vmatmul.f32.gmra.mxu1 %v3348_v15  ;;  %2655 = vmatmul.msk.f32.gmra.mxu0 %vm1101_vm4, %v3408_v40  ;;  %v964_v40 = vld [vmem:[#allocation2 + $0x118] sm:$0xff] }
 0x11c   : > { %1558 = vmatpush.msrb.mxu2 %v1441_v61  ;;  %1582 = vmatpush.msrb.mxu1 %v1477_v44 }
 0x11d   : > { %1304 = vmatmul.f32.gmra.mxu3 %v3348_v15  ;;  %1330 = vmatmul.f32.gmra.mxu2 %v3350_v16  ;;  %v1440_v15 = vld [vmem:[#allocation2 + $0x428] sm:$0xff] }
 0x11e   : > { %1398 = vmatpush.msra.mxu3 %v968_v25  ;;  %1559 = vmatpush.msrb.mxu2 %v1439_v55 }
 0x11f   : > { %1583 = vmatpush.msrb.mxu1 %v1475_v62  ;;  %1635 = vmatpush.msra.mxu0 %v1444_v0 }
 0x120   : > { %1648 = vmatpush.msra.mxu2 %v1502_v5  ;;  %1399 = vmatpush.msra.mxu3 %v966_v39 }
 0x121   : > { %1584 = vmatpush.msrb.mxu1 %v1473_v6  ;;  %1636 = vmatpush.msra.mxu0 %v1442_v7 }
 0x122   : > { %1649 = vmatpush.msra.mxu2 %v1500_v10  ;;  %1400 = vmatpush.msra.mxu3 %v964_v40 }
 0x123   : > { %1585 = vmatpush.msrb.mxu1 %v1471_v13  ;;  %1637 = vmatpush.msra.mxu0 %v1440_v15 }
 0x124   : > { %1650 = vmatpush.msra.mxu2 %v1498_v14  ;;  %1586 = vmatmul.f32.vlgmr.msrb.gmra.mxu1 %v1510_v24 }
 0x125   : > { %1638 = vmatmul.f32.vlgmr.msra.gmra.mxu0 %v3346_v11  ;;  %1401 = vmatpush.msra.mxu3 %v962_v20 }
 0x126   : > { %1651 = vmatpush.msra.mxu2 %v1496_v12  ;;  %1402 = vmatmul.f32.vlgmr.msra.gmra.mxu3 %v3322_v41  ;;  %v1484_v41 = vld [vmem:[#allocation2 + $0x588] sm:$0xff] }
 0x127   : > { %1560 = vmatmul.f32.vlgmr.msrb.gmra.mxu2 %v3346_v11  ;;  %2656 = vmatpush.msk.msrb.mxu3 %vm559_vm0, %v1503_v28  ;;  %v1504_v11 = vld [vmem:[#allocation2 + $0x628] sm:$0xf] }
 0x128   : > { %1652 = vmatpush.msra.mxu2 %v1494_v26 }
 0x129   : > { %2660 = vmatpush.msk.msra.mxu3 %vm559_vm0, %v1504_v11 }
 0x12a   : > { %1653 = vmatpush.msra.mxu2 %v1492_v63 }
 0x12c   : > { %1654 = vmatpush.msra.mxu2 %v1490_v30  ;;  %1589 = vmatmul.f32.gmra.mxu1 %v1517_v54 }
 0x12d   : > { %1641 = vmatmul.f32.gmra.mxu0 %v3369_v49 }
 0x12e   : > { %1655 = vmatpush.msra.mxu2 %v1488_v31  ;;  %1405 = vmatmul.f32.gmra.mxu3 %v3328_v45  ;;  %v1478_v45 = vld [vmem:[#allocation2 + $0x558] sm:$0xff] }
 0x12f   : > { %1563 = vmatmul.f32.gmra.mxu2 %v3369_v49  ;;  %v1476_v49 = vld [vmem:[#allocation2 + $0x548] sm:$0xff] }
 0x130   : > { %1656 = vmatpush.msra.mxu2 %v1486_v32 }
 0x132   : > { %1657 = vmatpush.msra.mxu2 %v1484_v41 }
 0x134   : > { %1658 = vmatpush.msra.mxu2 %v1482_v33  ;;  %1592 = vmatmul.f32.gmra.mxu1 %v1523_v3 }
 0x135   : > { %1644 = vmatmul.f32.gmra.mxu0 %v3385_v4 }
 0x136   : > { %1659 = vmatpush.msra.mxu2 %v1480_v34  ;;  %1408 = vmatmul.f32.gmra.mxu3 %v3350_v16 }
 0x137   : > { %1566 = vmatmul.f32.gmra.mxu2 %v3385_v4 }
 0x138   : > { %1660 = vmatpush.msra.mxu2 %v1478_v45 }
 0x13a   : > { %1661 = vmatpush.msra.mxu2 %v1476_v49 }
 0x13c   : > { %1662 = vmatpush.msra.mxu2 %v1474_v46 }
 0x13e   : > { %1663 = vmatpush.msra.mxu2 %v1472_v18  ;;  %2657 = vmatmul.msk.f32.vlgmr.msrb.gmra.mxu3 %vm1101_vm4, %v3401_v59 }
 0x13f   : > { %1664 = vmatmul.f32.vlgmr.msra.gmra.mxu2 %v1510_v24 }
 0x146   : > { %2658 = vmatmul.msk.f32.gmra.mxu3 %vm1101_vm4, %v3416_v1 }
 0x147   : > { %1667 = vmatmul.f32.gmra.mxu2 %v1517_v54 }
 0x14e   : > { %2659 = vmatmul.msk.f32.gmra.mxu3 %vm1101_vm4, %v3426_v22 }
 0x14f   : > { %1670 = vmatmul.f32.gmra.mxu2 %v1523_v3 }
 0x156   : > { %2661 = vmatmul.msk.f32.vlgmr.msra.gmra.mxu3 %vm1101_vm4, %v3401_v59 }
 0x157   : > { %v1131_v16 = vpop.f32.mrf.mxu1  ;;  %v1209_v47 = vpop.f32.mrf.mxu0 }
 0x15c   : > { %v1157_v4 = vpop.f32.mrf.mxu2 }
 0x15d   : > { %v1158_v35 = vadd.f32 %v1157_v4, %v1131_v16 }
 0x15e   : > { %2662 = vmatmul.msk.f32.gmra.mxu3 %vm1101_vm4, %v3416_v1 }
 0x15f   : > { %v1134_v36 = vpop.f32.mrf.mxu1 }
 0x160   : > { %v1212_v37 = vpop.f32.mrf.mxu0 }
 0x165   : > { %v1160_v38 = vpop.f32.mrf.mxu2 }
 0x166   : > { %v1161_v27 = vadd.f32 %v1160_v38, %v1134_v36  ;;  %2663 = vmatmul.msk.f32.gmra.mxu3 %vm1101_vm4, %v3426_v22 }
 0x167   : > { %v1137_v42 = vpop.f32.mrf.mxu1 }
 0x168   : > { %v1215_v1 = vpop.f32.mrf.mxu0 }
 0x16d   : > { %v1163_v48 = vpop.f32.mrf.mxu2 }
 0x16e   : > { %v1164_v51 = vadd.f32 %v1163_v48, %v1137_v42  ;;  %v3501_v48 = vld [vmem:[%s3981_s4] sm:$0x3] }
 0x16f   : > { %v1235_v8 = vpop.f32.mrf.mxu1 }
 0x170   : > { %v1236_v50 = vadd.f32 %v1235_v8, %v1209_v47  ;;  %v1351_v7 = vpop.f32.mrf.mxu0 }
 0x177   : > { %v1183_v59 = vpop.f32.mrf.mxu3  ;;  %v1238_v21 = vpop.f32.mrf.mxu1 }
 0x178   : > { %v1184_v52 = vadd.f32 %v1183_v59, %v1158_v35  ;;  %v1261_v53 = vpop.f32.mrf.mxu2  ;;  %v1239_v56 = vadd.f32 %v1238_v21, %v1212_v37  ;;  %v1354_v23 = vpop.f32.mrf.mxu0 }
 0x179   : > { %v1262_v57 = vadd.f32 %v1261_v53, %v1236_v50  ;;  %v1708_v53 = vperm.slane %v3501_v48, 0 }
 0x17f   : > { %v1186_v58 = vpop.f32.mrf.mxu3  ;;  %v1241_v60 = vpop.f32.mrf.mxu1 }
 0x180   : > { %v1187_v9 = vadd.f32 %v1186_v58, %v1161_v27  ;;  %v1264_v17 = vpop.f32.mrf.mxu2  ;;  %v1242_v61 = vadd.f32 %v1241_v60, %v1215_v1  ;;  %v1357_v12 = vpop.f32.mrf.mxu0 }
 0x181   : > { %v3478_v22 = vadd.f32 %v1264_v17, %v1239_v56 }
 0x187   : > { %v1189_v44 = vpop.f32.mrf.mxu3 }
 0x188   : > { %v1190_v43 = vadd.f32 %v1189_v44, %v1164_v51  ;;  %v1267_v25 = vpop.f32.mrf.mxu2  ;;  %v1377_v55 = vpop.f32.mrf.mxu1 }
 0x189   : > { %v3480_v62 = vadd.f32 %v1267_v25, %v1242_v61  ;;  %v1378_v0 = vadd.f32 %v1377_v55, %v1262_v57  ;;  %v3490_v63 = vpop.f32.mrf.mxu0  ;;  %v1853_v25 = vld [vmem:[%s3983_s6 + $0x78] sm:$0xff]  ;;  %v1852_v55 = vld [vmem:[%s3983_s6 + $0x70] sm:$0xff] }
 0x18a   : > { %1869 = vmatpush.msrb.mxu2 %v1853_v25  ;;  %v2676_v25 = vld [vmem:[%s3983_s6 + $0xc0] sm:$0xff] }
 0x18c   : > { %1870 = vmatpush.msrb.mxu2 %v1852_v55  ;;  %v2698_v55 = vld [vmem:[%s3983_s6 + $0x170] sm:$0xff] }
 0x190   : > { %v1299_v5 = vpop.f32.mrf.mxu3  ;;  %v1325_v6 = vpop.f32.mrf.mxu2 }
 0x191   : > { %v1300_v39 = vadd.f32 %v1299_v5, %v1184_v52  ;;  %v3482_v15 = vpop.f32.mrf.mxu1  ;;  %v3494_v54 = vpop.f32.mrf.mxu0  ;;  %v2691_v5 = vld [vmem:[%s3983_s6 + $0x138] sm:$0xff] }
 0x193   : > { %v1326_v46 = vadd.f32 %v1325_v6, %v1300_v39  ;;  %v1851_v39 = vld [vmem:[%s3983_s6 + $0x68] sm:$0xff]  ;;  %v1381_v6 = vadd.f32 %v3482_v15, %v3478_v22  ;;  %v1849_v15 = vld [vmem:[%s3983_s6 + $0x58] sm:$0xff] }
 0x194   : > { %1871 = vmatpush.msrb.mxu2 %v1851_v39  ;;  %v1725_v22 = vld [vmem:[%s3982_s5 + $0x8] sm:$0xf]  ;;  %v1858_v39 = vld [vmem:[%s3983_s6 + $0xa0] sm:$0xff] }
 0x195   : > { %v1352_v51 = vadd.f32 %v1351_v7, %v1326_v46  ;;  %v2690_v7 = vld [vmem:[%s3983_s6 + $0x130] sm:$0xff]  ;;  %v1709_v46 = vperm.slane %v3501_v48, 1  ;;  %v2684_v48 = vld [vmem:[%s3983_s6 + $0x100] sm:$0xff] }
 0x198   : > { %v1302_v10 = vpop.f32.mrf.mxu3  ;;  %v1328_v40 = vpop.f32.mrf.mxu2 }
 0x199   : > { %v3486_v24 = vpop.f32.mrf.mxu1  ;;  %v1303_v2 = vadd.f32 %v1302_v10, %v1187_v9  ;;  %v3496_v33 = vpop.f32.mrf.mxu0  ;;  %v1850_v10 = vld [vmem:[%s3983_s6 + $0x60] sm:$0xff] }
 0x19a   : > { %1872 = vmatpush.msrb.mxu2 %v1850_v10  ;;  %v2695_v10 = vld [vmem:[%s3983_s6 + $0x158] sm:$0xff] }
 0x19b   : > { %v1329_v45 = vadd.f32 %v1328_v40, %v1303_v2  ;;  %v1384_v40 = vadd.f32 %v3486_v24, %v3480_v62  ;;  %v2689_v62 = vld [vmem:[%s3983_s6 + $0x128] sm:$0xff] }
 0x19c   : > { %1873 = vmatpush.msrb.mxu2 %v1849_v15  ;;  %v2692_v15 = vld [vmem:[%s3983_s6 + $0x140] sm:$0xff] }
 0x19d   : > { %v1355_v36 = vadd.f32 %v1354_v23, %v1329_v45 }
 0x1a0   : > { %v1305_v13 = vpop.f32.mrf.mxu3  ;;  %v1331_v14 = vpop.f32.mrf.mxu2 }
 0x1a1   : > { %v1587_v30 = vpop.f32.mrf.mxu1  ;;  %v1306_v3 = vadd.f32 %v1305_v13, %v1190_v43  ;;  %v3507_v43 = vld [vmem:[%s3982_s5] sm:$0xff] }
 0x1a2   : > { %v1639_v59 = vpop.f32.mrf.mxu0 }
 0x1a3   : > { %v1332_v18 = vadd.f32 %v1331_v14, %v1306_v3 }
 0x1a5   : > { %v1358_v8 = vadd.f32 %v1357_v12, %v1332_v18  ;;  %v2686_v18 = vld [vmem:[%s3983_s6 + $0x110] sm:$0xff] }
 0x1a9   : > { %v1403_v19 = vpop.f32.mrf.mxu3  ;;  %v1590_v41 = vpop.f32.mrf.mxu1 }
 0x1aa   : > { %v3484_v20 = vadd.f32 %v1403_v19, %v1378_v0  ;;  %v1561_v28 = vpop.f32.mrf.mxu2  ;;  %v1642_v44 = vpop.f32.mrf.mxu0 }
 0x1ab   : > { %v1588_v16 = vadd.f32 %v1587_v30, %v1561_v28 }
 0x1b1   : > { %v3488_v26 = vpop.f32.mrf.mxu3  ;;  %v1593_v35 = vpop.f32.mrf.mxu1 }
 0x1b2   : > { %v1564_v31 = vpop.f32.mrf.mxu2  ;;  %v1407_v13 = vadd.f32 %v3488_v26, %v1381_v6  ;;  %v1645_v24 = vpop.f32.mrf.mxu0  ;;  %v1848_v26 = vld [vmem:[%s3983_s6 + $0x50] sm:$0xff]  ;;  %v2696_v6 = vld [vmem:[%s3983_s6 + $0x160] sm:$0xff] }
 0x1b3   : > { %v1591_v49 = vadd.f32 %v1590_v41, %v1564_v31  ;;  %1874 = vmatpush.msrb.mxu2 %v1848_v26 }
 0x1b4   : > { %v1433_v30 = vadd.f32 %v3494_v54, %v1407_v13  ;;  %v2687_v54 = vld [vmem:[%s3983_s6 + $0x118] sm:$0xff]  ;;  %v2694_v13 = vld [vmem:[%s3983_s6 + $0x150] sm:$0xff] }
 0x1b9   : > { %v3492_v29 = vpop.f32.mrf.mxu3 }
 0x1ba   : > { %v1567_v11 = vpop.f32.mrf.mxu2  ;;  %v1410_v19 = vadd.f32 %v3492_v29, %v1384_v40  ;;  %v2688_v29 = vld [vmem:[%s3983_s6 + $0x120] sm:$0xff]  ;;  %v1856_v40 = vld [vmem:[%s3983_s6 + $0x90] sm:$0xff] }
 0x1bb   : > { %v1594_v38 = vadd.f32 %v1593_v35, %v1567_v11  ;;  %v1430_v11 = vadd.f32 %v3490_v63, %v3484_v20  ;;  %v2668_v20 = vld [vmem:[%s3982_s5 + $0x10] sm:$0xff] }
 0x1bc   : > { %v1436_v2 = vadd.f32 %v3496_v33, %v1410_v19 }
 0x1c1   : > { %v1613_v32 = vpop.f32.mrf.mxu3 }
 0x1c2   : > { %v1614_v27 = vadd.f32 %v1613_v32, %v1588_v16  ;;  %v1665_v42 = vpop.f32.mrf.mxu2 }
 0x1c3   : > { %v1666_v12 = vadd.f32 %v1665_v42, %v1639_v59  ;;  %v2685_v42 = vld [vmem:[%s3983_s6 + $0x108] sm:$0xff] }
 0x1c4   : > { %v1700_v52 = vadd.f32 %v1614_v27, %v1352_v51  ;;  %v1847_v27 = vld [vmem:[%s3983_s6 + $0x48] sm:$0xff]  ;;  %v1845_v51 = vld [vmem:[%s3983_s6 + $0x38] sm:$0xff] }
 0x1c5   : > { %1875 = vmatpush.msrb.mxu2 %v1847_v27  ;;  %v1843_v59 = vld [vmem:[%s3983_s6 + $0x28] sm:$0xff]  ;;  %v2726_v27 = vld [vmem:[%s3984_s7 + $0x100] sm:$0xff] }
 0x1c6   : > { %v1712_v58 = vadd.f32 %v1708_v53, %v1700_v52  ;;  %v2681_v52 = vld [vmem:[%s3983_s6 + $0xe8] sm:$0xff] }
 0x1c8   : > { %v1718_v61 = vmax.f32 %v1712_v58, 0.0  ;;  %v2678_v58 = vld [vmem:[%s3983_s6 + $0xd0] sm:$0xff] }
 0x1c9   : > { %v1616_v34 = vpop.f32.mrf.mxu3 }
 0x1ca   : > { %v1617_v4 = vadd.f32 %v1616_v34, %v1591_v49  ;;  %v1668_v17 = vpop.f32.mrf.mxu2 }
 0x1cb   : > { %v1669_v23 = vadd.f32 %v1668_v17, %v1642_v44  ;;  %v1861_v17 = vld [vmem:[%s3983_s6 + $0xb8] sm:$0xff]  ;;  %v1838_v44 = vld [vmem:[%s3983_s6] sm:$0xff] }
 0x1cc   : > { %v1702_v50 = vadd.f32 %v1617_v4, %v1355_v36 }
 0x1ce   : > { %v1714_v57 = vadd.f32 %v1708_v53, %v1702_v50  ;;  %v1844_v50 = vld [vmem:[%s3983_s6 + $0x30] sm:$0xff] }
 0x1d0   : > { %v1720_v60 = vmax.f32 %v1714_v57, 0.0  ;;  %v2679_v57 = vld [vmem:[%s3983_s6 + $0xd8] sm:$0xff] }
 0x1d1   : > { %v1619_v47 = vpop.f32.mrf.mxu3 }
 0x1d2   : > { %v1620_v37 = vadd.f32 %v1619_v47, %v1594_v38  ;;  %v1671_v14 = vpop.f32.mrf.mxu2  ;;  %v2669_v38 = vld [vmem:[%s3982_s5 + $0x18] sm:$0xf]  ;;  %v1846_v47 = vld [vmem:[%s3983_s6 + $0x40] sm:$0xff] }
 0x1d3   : > { %v1672_v31 = vadd.f32 %v1671_v14, %v1645_v24  ;;  %1876 = vmatpush.msrb.mxu2 %v1846_v47  ;;  %v2693_v14 = vld [vmem:[%s3983_s6 + $0x148] sm:$0xff]  ;;  %v2709_v47 = vld [vmem:[%s3984_s7 + $0x98] sm:$0xff] }
 0x1d4   : > { %v1704_v21 = vadd.f32 %v1620_v37, %v1358_v8  ;;  %v2683_v8 = vld [vmem:[%s3983_s6 + $0xf8] sm:$0xff]  ;;  %v2682_v37 = vld [vmem:[%s3983_s6 + $0xf0] sm:$0xff] }
 0x1d5   : > { %1877 = vmatpush.msrb.mxu2 %v1845_v51  ;;  %v1989_v51 = vld [vmem:[%s3984_s7 + $0x8] sm:$0xff] }
 0x1d6   : > { %v1716_v56 = vadd.f32 %v1708_v53, %v1704_v21  ;;  %v1842_v21 = vld [vmem:[%s3983_s6 + $0x20] sm:$0xff] }
 0x1d7   : > { %1878 = vmatpush.msrb.mxu2 %v1844_v50  ;;  %v2680_v53 = vld [vmem:[%s3983_s6 + $0xe0] sm:$0xff]  ;;  %v2724_v50 = vld [vmem:[%s3984_s7 + $0xf0] sm:$0xff] }
 0x1d8   : > { %v1722_v1 = vmax.f32 %v1716_v56, 0.0  ;;  %v1841_v56 = vld [vmem:[%s3983_s6 + $0x18] sm:$0xff] }
 0x1d9   : > { %v1691_v9 = vpop.f32.mrf.mxu3  ;;  %1879 = vmatpush.msrb.mxu2 %v1843_v59  ;;  %v2707_v59 = vld [vmem:[%s3984_s7 + $0x88] sm:$0xff] }
 0x1da   : > { %1746 = vmatpush.msra.mxu1 %v1722_v1  ;;  %v1692_v32 = vadd.f32 %v1691_v9, %v1666_v12  ;;  %v1839_v9 = vld [vmem:[%s3983_s6 + $0x8] sm:$0xff] }
 0x1db   : > { %1880 = vmatpush.msrb.mxu2 %v1842_v21  ;;  %v2706_v21 = vld [vmem:[%s3984_s7 + $0x80] sm:$0xff] }
 0x1dc   : > { %1747 = vmatpush.msra.mxu1 %v1720_v60  ;;  %v1701_v45 = vadd.f32 %v1692_v32, %v1430_v11 }
 0x1dd   : > { %1881 = vmatpush.msrb.mxu2 %v1841_v56  ;;  %v2705_v56 = vld [vmem:[%s3984_s7 + $0x78] sm:$0xff] }
 0x1de   : > { %1748 = vmatpush.msra.mxu1 %v1718_v61  ;;  %v1713_v4 = vadd.f32 %v1709_v46, %v1701_v45  ;;  %v1995_v45 = vld [vmem:[%s3984_s7 + $0x38] sm:$0xff] }
 0x1df   : > { %2664 = vmatmul.msk.f32.vlgmr.msra.gmra.mxu1 %vm1726_vm5, %v3507_v43 }
 0x1e0   : > { %1801 = vmatpush.msrb.mxu1 %v1722_v1  ;;  %v1719_v36 = vmax.f32 %v1713_v4, 0.0  ;;  %v1840_v1 = vld [vmem:[%s3983_s6 + $0x10] sm:$0xff]  ;;  %v2711_v4 = vld [vmem:[%s3984_s7 + $0xa8] sm:$0xff] }
 0x1e1   : > { %v1694_v0 = vpop.f32.mrf.mxu3  ;;  %1882 = vmatpush.msrb.mxu2 %v1840_v1  ;;  %v2704_v1 = vld [vmem:[%s3984_s7 + $0x70] sm:$0xff] }
 0x1e2   : > { %1802 = vmatpush.msrb.mxu1 %v1720_v60  ;;  %v1695_v28 = vadd.f32 %v1694_v0, %v1669_v23  ;;  %v2677_v60 = vld [vmem:[%s3983_s6 + $0xc8] sm:$0xff] }
 0x1e3   : > { %1883 = vmatpush.msrb.mxu2 %v1839_v9  ;;  %v1859_v0 = vld [vmem:[%s3983_s6 + $0xa8] sm:$0xff] }
 0x1e4   : > { %1803 = vmatpush.msrb.mxu1 %v1718_v61  ;;  %v1703_v34 = vadd.f32 %v1695_v28, %v1433_v30  ;;  %v2699_v61 = vld [vmem:[%s3983_s6 + $0x178] sm:$0xff]  ;;  %v1855_v23 = vld [vmem:[%s3983_s6 + $0x88] sm:$0xff] }
 0x1e5   : > { %1884 = vmatpush.msrb.mxu2 %v1838_v44  ;;  %v2703_v9 = vld [vmem:[%s3984_s7 + $0x68] sm:$0xff] }
 0x1e6   : > { %1940 = vmatpush.msra.mxu1 %v2691_v5  ;;  %v1715_v33 = vadd.f32 %v1709_v46, %v1703_v34  ;;  %v2697_v5 = vld [vmem:[%s3983_s6 + $0x168] sm:$0xff]  ;;  %v1998_v34 = vld [vmem:[%s3984_s7 + $0x50] sm:$0xff] }
 0x1e7   : > { %2665 = vmatmul.msk.f32.gmra.mxu1 %vm1726_vm5, %v1725_v22 }
 0x1e8   : > { %1941 = vmatpush.msra.mxu1 %v2690_v7  ;;  %v1721_v35 = vmax.f32 %v1715_v33, 0.0  ;;  %v1857_v7 = vld [vmem:[%s3983_s6 + $0x98] sm:$0xff]  ;;  %v2728_v33 = vld [vmem:[%s3984_s7 + $0x110] sm:$0xff] }
 0x1e9   : > { %v1697_v41 = vpop.f32.mrf.mxu3 }
 0x1ea   : > { %1942 = vmatpush.msra.mxu1 %v2689_v62  ;;  %v1698_v3 = vadd.f32 %v1697_v41, %v1672_v31 }
 0x1ec   : > { %1943 = vmatpush.msra.mxu1 %v2688_v29  ;;  %v1705_v49 = vadd.f32 %v1698_v3, %v1436_v2  ;;  %v1999_v2 = vld [vmem:[%s3984_s7 + $0x58] sm:$0xff]  ;;  %v1997_v3 = vld [vmem:[%s3984_s7 + $0x48] sm:$0xff] }
 0x1ed   : > { %2054 = vmatpush.msra.mxu2 %v1999_v2  ;;  %v2127_v2 = vld [vmem:[%s3986_s9 + $0x8] sm:$0xff] }
 0x1ee   : > { %1944 = vmatpush.msra.mxu1 %v2687_v54  ;;  %v1717_v63 = vadd.f32 %v1709_v46, %v1705_v49  ;;  %v1996_v54 = vld [vmem:[%s3984_s7 + $0x40] sm:$0xff]  ;;  %v1994_v49 = vld [vmem:[%s3984_s7 + $0x30] sm:$0xff]  ;;  %v2713_v46 = vld [vmem:[%s3984_s7 + $0xb8] sm:$0xff] }
 0x1ef   : > { %2670 = vmatmul.msk.f32.vlgmr.msrb.gmra.mxu1 %vm1726_vm5, %v2668_v20  ;;  %2055 = vmatpush.msra.mxu2 %v1998_v34  ;;  %v2738_v34 = vld [vmem:[%s3986_s9 + $0x70] sm:$0xff] }
 0x1f0   : > { %1945 = vmatpush.msra.mxu1 %v2686_v18  ;;  %v1723_v16 = vmax.f32 %v1717_v63, 0.0  ;;  %v2729_v18 = vld [vmem:[%s3984_s7 + $0x118] sm:$0xff]  ;;  %v2712_v63 = vld [vmem:[%s3984_s7 + $0xb0] sm:$0xff] }
 0x1f1   : > { %2056 = vmatpush.msra.mxu2 %v1997_v3  ;;  %v2750_v3 = vld [vmem:[%s3986_s9 + $0xb0] sm:$0xff] }
 0x1f2   : > { %1769 = vmatpush.msrb.mxu0 %v1723_v16  ;;  %1824 = vmatpush.msrb.mxu3 %v1723_v16  ;;  %v1992_v16 = vld [vmem:[%s3984_s7 + $0x20] sm:$0xff] }
 0x1f3   : > { %1946 = vmatpush.msra.mxu1 %v2685_v42  ;;  %2057 = vmatpush.msra.mxu2 %v1996_v54  ;;  %v1990_v42 = vld [vmem:[%s3984_s7 + $0x10] sm:$0xff]  ;;  %v2126_v54 = vld [vmem:[%s3986_s9] sm:$0xff] }
 0x1f4   : > { %1770 = vmatpush.msrb.mxu0 %v1721_v35  ;;  %1825 = vmatpush.msrb.mxu3 %v1721_v35  ;;  %v2727_v35 = vld [vmem:[%s3984_s7 + $0x108] sm:$0xff] }
 0x1f5   : > { %1947 = vmatpush.msra.mxu1 %v2684_v48  ;;  %2058 = vmatpush.msra.mxu2 %v1995_v45  ;;  %v2725_v48 = vld [vmem:[%s3984_s7 + $0xf8] sm:$0xff]  ;;  %v2737_v45 = vld [vmem:[%s3986_s9 + $0x68] sm:$0xff] }
 0x1f6   : > { %1771 = vmatpush.msrb.mxu0 %v1719_v36  ;;  %1826 = vmatpush.msrb.mxu3 %v1719_v36  ;;  %v1991_v36 = vld [vmem:[%s3984_s7 + $0x18] sm:$0xff] }
 0x1f7   : > { %2672 = vmatmul.msk.f32.vlgmr.msrb.gmra.mxu3 %vm1726_vm5, %v2668_v20  ;;  %2666 = vmatmul.msk.f32.vlgmr.msrb.gmra.mxu0 %vm1726_vm5, %v3507_v43  ;;  %v1860_v43 = vld [vmem:[%s3983_s6 + $0xb0] sm:$0xff]  ;;  %v1993_v20 = vld [vmem:[%s3984_s7 + $0x28] sm:$0xff] }
 0x1f8   : > { %2671 = vmatmul.msk.f32.gmra.mxu1 %vm1726_vm5, %v2669_v38  ;;  %1900 = vmatpush.msra.mxu0 %v1861_v17  ;;  %v2702_v17 = vld [vmem:[%s3984_s7 + $0x60] sm:$0xff] }
 0x1f9   : > { %1948 = vmatpush.msra.mxu1 %v2683_v8  ;;  %1971 = vmatpush.msra.mxu3 %v2699_v61  ;;  %v2708_v8 = vld [vmem:[%s3984_s7 + $0x90] sm:$0xff]  ;;  %v2718_v61 = vld [vmem:[%s3984_s7 + $0xc0] sm:$0xff] }
 0x1fa   : > { %1901 = vmatpush.msra.mxu0 %v1860_v43  ;;  %2059 = vmatpush.msra.mxu2 %v1994_v49  ;;  %v2749_v49 = vld [vmem:[%s3986_s9 + $0xa8] sm:$0xff] }
 0x1fb   : > { %1949 = vmatpush.msra.mxu1 %v2682_v37  ;;  %1972 = vmatpush.msra.mxu3 %v2698_v55  ;;  %v1988_v37 = vld [vmem:[%s3984_s7] sm:$0xff] }
 0x1fc   : > { %1902 = vmatpush.msra.mxu0 %v1859_v0  ;;  %2060 = vmatpush.msra.mxu2 %v1993_v20  ;;  %v2735_v20 = vld [vmem:[%s3986_s9 + $0x58] sm:$0xff] }
 0x1fd   : > { %1950 = vmatpush.msra.mxu1 %v2681_v52  ;;  %1973 = vmatpush.msra.mxu3 %v2697_v5  ;;  %v2723_v52 = vld [vmem:[%s3984_s7 + $0xe8] sm:$0xff] }
 0x1fe   : > { %1903 = vmatpush.msra.mxu0 %v1858_v39  ;;  %2061 = vmatpush.msra.mxu2 %v1992_v16  ;;  %v2746_v16 = vld [vmem:[%s3986_s9 + $0x90] sm:$0xff] }
 0x1ff   : > { %2673 = vmatmul.msk.f32.gmra.mxu3 %vm1726_vm5, %v2669_v38  ;;  %2667 = vmatmul.msk.f32.gmra.mxu0 %vm1726_vm5, %v1725_v22  ;;  %v1854_v22 = vld [vmem:[%s3983_s6 + $0x80] sm:$0xff] }
 0x200   : > { %1951 = vmatpush.msra.mxu1 %v2680_v53  ;;  %1974 = vmatpush.msra.mxu3 %v2696_v6  ;;  %v2710_v38 = vld [vmem:[%s3984_s7 + $0xa0] sm:$0xff] }
 0x201   : > { %1904 = vmatpush.msra.mxu0 %v1857_v7  ;;  %2062 = vmatpush.msra.mxu2 %v1991_v36  ;;  %v2722_v53 = vld [vmem:[%s3984_s7 + $0xe0] sm:$0xff] }
 0x202   : > { %1952 = vmatpush.msra.mxu1 %v2679_v57  ;;  %1975 = vmatpush.msra.mxu3 %v2695_v10  ;;  %v2721_v57 = vld [vmem:[%s3984_s7 + $0xd8] sm:$0xff]  ;;  %v2732_v36 = vld [vmem:[%s3986_s9 + $0x40] sm:$0xff] }
 0x203   : > { %1905 = vmatpush.msra.mxu0 %v1856_v40  ;;  %2063 = vmatpush.msra.mxu2 %v1990_v42 }
 0x204   : > { %1953 = vmatpush.msra.mxu1 %v2678_v58  ;;  %1976 = vmatpush.msra.mxu3 %v2694_v13  ;;  %v2720_v58 = vld [vmem:[%s3984_s7 + $0xd0] sm:$0xff] }
 0x205   : > { %1906 = vmatpush.msra.mxu0 %v1855_v23  ;;  %2064 = vmatpush.msra.mxu2 %v1989_v51 }
 0x206   : > { %1954 = vmatpush.msra.mxu1 %v2677_v60  ;;  %1977 = vmatpush.msra.mxu3 %v2693_v14  ;;  %v2719_v60 = vld [vmem:[%s3984_s7 + $0xc8] sm:$0xff] }
 0x207   : > { %1907 = vmatpush.msra.mxu0 %v1854_v22  ;;  %2065 = vmatpush.msra.mxu2 %v1988_v37 }
 0x208   : > { %1955 = vmatpush.msra.mxu1 %v2676_v25  ;;  %1978 = vmatpush.msra.mxu3 %v2692_v15 }
 0x209   : > { %2027 = vmatpush.msrb.mxu0 %v2713_v46  ;;  %v2736_v46 = vld [vmem:[%s3986_s9 + $0x60] sm:$0xff] }
 0x20a   : > { %2097 = vmatpush.msrb.mxu3 %v2729_v18  ;;  %v2748_v18 = vld [vmem:[%s3986_s9 + $0xa0] sm:$0xff] }
 0x20b   : > { %2028 = vmatpush.msrb.mxu0 %v2712_v63  ;;  %v2747_v63 = vld [vmem:[%s3986_s9 + $0x98] sm:$0xff] }
 0x20c   : > { %2098 = vmatpush.msrb.mxu3 %v2728_v33  ;;  %v2734_v33 = vld [vmem:[%s3986_s9 + $0x50] sm:$0xff] }
 0x20d   : > { %2029 = vmatpush.msrb.mxu0 %v2711_v4  ;;  %v2733_v4 = vld [vmem:[%s3986_s9 + $0x48] sm:$0xff] }
 0x20e   : > { %2099 = vmatpush.msrb.mxu3 %v2727_v35  ;;  %v2745_v35 = vld [vmem:[%s3986_s9 + $0x88] sm:$0xff] }
 0x20f   : > { %2030 = vmatpush.msrb.mxu0 %v2710_v38  ;;  %v2744_v38 = vld [vmem:[%s3986_s9 + $0x80] sm:$0xff] }
 0x210   : > { %2100 = vmatpush.msrb.mxu3 %v2726_v27 }
 0x211   : > { %2031 = vmatpush.msrb.mxu0 %v2709_v47 }
 0x212   : > { %2101 = vmatpush.msrb.mxu3 %v2725_v48  ;;  %v2828_v48 = vld [vmem:[%s3985_s8] ss:$0 sm:$0xff] }
 0x213   : > { %2032 = vmatpush.msrb.mxu0 %v2708_v8 }
 0x214   : > { %2102 = vmatpush.msrb.mxu3 %v2724_v50 }
 0x215   : > { %2033 = vmatpush.msrb.mxu0 %v2707_v59 }
 0x216   : > { %2103 = vmatpush.msrb.mxu3 %v2723_v52 }
 0x217   : > { %2034 = vmatpush.msrb.mxu0 %v2706_v21 }
 0x218   : > { %2104 = vmatpush.msrb.mxu3 %v2722_v53 }
 0x219   : > { %2035 = vmatpush.msrb.mxu0 %v2705_v56 }
 0x21a   : > { %2105 = vmatpush.msrb.mxu3 %v2721_v57 }
 0x21b   : > { %2036 = vmatpush.msrb.mxu0 %v2704_v1 }
 0x21c   : > { %2106 = vmatpush.msrb.mxu3 %v2720_v58 }
 0x21d   : > { %2037 = vmatpush.msrb.mxu0 %v2703_v9 }
 0x21e   : > { %2107 = vmatpush.msrb.mxu3 %v2719_v60 }
 0x21f   : > { %2038 = vmatpush.msrb.mxu0 %v2702_v17 }
 0x220   : > { %2108 = vmatpush.msrb.mxu3 %v2718_v61 }
 0x25c   : > { %v1750_v19 = vpop.f32.mrf.mxu1 }
 0x264   : > { %v1753_v12 = vpop.f32.mrf.mxu1 }
 0x26c   : > { %v1805_v28 = vpop.f32.mrf.mxu1 }
 0x26d   : > { %v1834_v62 = vmax.f32 %v1750_v19, %v1805_v28 }
 0x26f   : > { %1885 = vmatmul.f32.vlgmr.msrb.gmra.mxu2 %v1834_v62  ;;  %1956 = vmatmul.f32.vlgmr.msra.gmra.mxu1 %v1834_v62 }
 0x274   : > { %v1773_v30 = vpop.f32.mrf.mxu0 }
 0x275   : > { %v1808_v24 = vpop.f32.mrf.mxu1 }
 0x276   : > { %v1836_v26 = vmax.f32 %v1753_v12, %v1808_v24  ;;  %v2133_v24 = vld [vmem:[%s3986_s9 + $0x38] sm:$0xf] }
 0x278   : > { %1888 = vmatmul.f32.gmra.mxu2 %v1836_v26  ;;  %1959 = vmatmul.f32.gmra.mxu1 %v1836_v26  ;;  %v2132_v26 = vld [vmem:[%s3986_s9 + $0x30] sm:$0xff] }
 0x27a   : > { %v1828_v31 = vpop.f32.mrf.mxu3 }
 0x27b   : > { %v1835_v32 = vmax.f32 %v1773_v30, %v1828_v31  ;;  %v2131_v30 = vld [vmem:[%s3986_s9 + $0x28] sm:$0xff]  ;;  %v2130_v31 = vld [vmem:[%s3986_s9 + $0x20] sm:$0xff] }
 0x27c   : > { %v1776_v29 = vpop.f32.mrf.mxu0 }
 0x27d   : > { %2674 = vmatmul.msk.f32.vlgmr.msra.gmra.mxu0 %vm1862_vm6, %v1835_v32  ;;  %2700 = vmatmul.msk.f32.vlgmr.msra.gmra.mxu3 %vm1862_vm6, %v1835_v32  ;;  %v2129_v32 = vld [vmem:[%s3986_s9 + $0x18] sm:$0xff] }
 0x27e   : > { %2742 = vmatpush.msk.msra.mxu0 %vm559_vm0, %v2133_v24 }
 0x280   : > { %2188 = vmatpush.msra.mxu0 %v2132_v26 }
 0x282   : > { %v1831_v41 = vpop.f32.mrf.mxu3  ;;  %2189 = vmatpush.msra.mxu0 %v2131_v30  ;;  %v2350_v30 = vld [vmem:[%s3990_s13 + $0x8] sm:$0xff] }
 0x283   : > { %v1837_v11 = vmax.f32 %v1776_v29, %v1831_v41  ;;  %v2128_v29 = vld [vmem:[%s3986_s9 + $0x10] sm:$0xff]  ;;  %v2739_v41 = vld [vmem:[%s3986_s9 + $0x78] sm:$0xf] }
 0x284   : > { %2190 = vmatpush.msra.mxu0 %v2130_v31  ;;  %2740 = vmatpush.msk.msrb.mxu1 %vm559_vm0, %v2739_v41  ;;  %v2349_v31 = vld [vmem:[%s3990_s13] sm:$0xff]  ;;  %v2764_v41 = vld [vmem:[%s3990_s13 + $0x10] sm:$0xff] }
 0x285   : > { %2675 = vmatmul.msk.f32.gmra.mxu0 %vm1862_vm6, %v1837_v11  ;;  %2701 = vmatmul.msk.f32.gmra.mxu3 %vm1862_vm6, %v1837_v11  ;;  %v2751_v11 = vld [vmem:[%s3986_s9 + $0xb8] sm:$0xf] }
 0x286   : > { %2191 = vmatpush.msra.mxu0 %v2129_v32  ;;  %2752 = vmatpush.msk.msrb.mxu2 %vm559_vm0, %v2751_v11  ;;  %v2765_v32 = vld [vmem:[%s3990_s13 + $0x18] sm:$0xff] }
 0x287   : > { %2163 = vmatpush.msrb.mxu1 %v2738_v34  ;;  %v2771_v11 = vld [vmem:[%s3990_s13 + $0x38] sm:$0xff]  ;;  %v2770_v34 = vld [vmem:[%s3990_s13 + $0x30] sm:$0xff] }
 0x288   : > { %2192 = vmatpush.msra.mxu0 %v2128_v29  ;;  %2225 = vmatpush.msrb.mxu2 %v2750_v3  ;;  %v2768_v29 = vld [vmem:[%s3990_s13 + $0x28] sm:$0xff] }
 0x289   : > { %2164 = vmatpush.msrb.mxu1 %v2737_v45 }
 0x28a   : > { %2193 = vmatpush.msra.mxu0 %v2127_v2  ;;  %2226 = vmatpush.msrb.mxu2 %v2749_v49  ;;  %v2767_v2 = vld [vmem:[%s3990_s13 + $0x20] sm:$0xff] }
 0x28b   : > { %2165 = vmatpush.msrb.mxu1 %v2736_v46 }
 0x28c   : > { %2194 = vmatpush.msra.mxu0 %v2126_v54  ;;  %2227 = vmatpush.msrb.mxu2 %v2748_v18 }
 0x28d   : > { %2166 = vmatpush.msrb.mxu1 %v2735_v20  ;;  %v2348_v20 = vld [vmem:[%s3991_s14] sm:$0x1] }
 0x28e   : > { %2228 = vmatpush.msrb.mxu2 %v2747_v63 }
 0x28f   : > { %2167 = vmatpush.msrb.mxu1 %v2734_v33 }
 0x290   : > { %2229 = vmatpush.msrb.mxu2 %v2746_v16 }
 0x291   : > { %2168 = vmatpush.msrb.mxu1 %v2733_v4 }
 0x292   : > { %2230 = vmatpush.msrb.mxu2 %v2745_v35 }
 0x293   : > { %2169 = vmatpush.msrb.mxu1 %v2732_v36 }
 0x294   : > { %2231 = vmatpush.msrb.mxu2 %v2744_v38 }
 0x2ec   : > { %v1957_v43 = vpop.f32.mrf.mxu1 }
 0x2f2   : > { %v1886_v25 = vpop.f32.mrf.mxu2 }
 0x2f5   : > { %v1960_v7 = vpop.f32.mrf.mxu1 }
 0x2fa   : > { %v1909_v44 = vpop.f32.mrf.mxu0 }
 0x2fb   : > { %v1910_v0 = vadd.f32 %v1909_v44, %v1886_v25  ;;  %v1889_v10 = vpop.f32.mrf.mxu2  ;;  %v2296_v25 = vld [vmem:[%s3989_s12 + $0x10] sm:$0xff] }
 0x300   : > { %v1980_v55 = vpop.f32.mrf.mxu3 }
 0x301   : > { %v1981_v5 = vadd.f32 %v1980_v55, %v1957_v43  ;;  %v2297_v43 = vld [vmem:[%s3989_s12 + $0x18] sm:$0xff] }
 0x302   : > { %v1912_v6 = vpop.f32.mrf.mxu0 }
 0x303   : > { %v1986_v39 = vmax.f32 %v1910_v0, %v1981_v5  ;;  %v1913_v13 = vadd.f32 %v1912_v6, %v1889_v10 }
 0x305   : > { %2716 = vmatmul.msk.f32.vlgmr.msra.gmra.mxu2 %vm2018_vm7, %v1986_v39  ;;  %v2015_v22 = vrot.slane %v1986_v39, 1  ;;  %v2086_v15 = vrot.slane %v1986_v39, 2  ;;  %v2829_v39 = vld [vmem:[%s3987_s10] ss:$0 sm:$0xff] }
 0x306   : > { %2369 = vmatpush.msra.mxu2 %v2350_v30 }
 0x308   : > { %v1983_v40 = vpop.f32.mrf.mxu3  ;;  %2370 = vmatpush.msra.mxu2 %v2349_v31 }
 0x309   : > { %v1984_v23 = vadd.f32 %v1983_v40, %v1960_v7 }
 0x30b   : > { %v1987_v14 = vmax.f32 %v1913_v13, %v1984_v23  ;;  %v2755_v13 = vld [vmem:[%s3988_s11 + $0x4] sm:$0xf]  ;;  %v2243_v23 = vld [vmem:[%s3988_s11] sm:$0xf] }
 0x30d   : > { %v2016_v19 = vrot.slane %v1987_v14, 1  ;;  %v2087_v12 = vrot.slane %v1987_v14, 2  ;;  %2717 = vmatmul.msk.f32.gmra.mxu2 %vm2018_vm7, %v1987_v14  ;;  %v2761_v14 = vld [vmem:[%s3989_s12 + $0x38] sm:$0xff] }
 0x30f   : > { %v2017_v28 = vsel %vm542_vm1, %v2015_v22, %v2016_v19  ;;  %v2088_v62 = vsel %vm773_vm3, %v2086_v15, %v2087_v12  ;;  %v2760_v22 = vld [vmem:[%s3989_s12 + $0x30] sm:$0xff]  ;;  %v2295_v15 = vld [vmem:[%s3989_s12 + $0x8] sm:$0xff] }
 0x310   : > { %2714 = vmatmul.msk.f32.vlgmr.msrb.gmra.mxu0 %vm2018_vm7, %v2017_v28  ;;  %2730 = vmatmul.msk.f32.vlgmr.msrb.gmra.mxu3 %vm2018_vm7, %v2088_v62  ;;  %v2758_v28 = vld [vmem:[%s3989_s12 + $0x20] sm:$0xff] }
 0x311   : > { %2314 = vmatpush.msrb.mxu0 %v2297_v43 }
 0x313   : > { %2315 = vmatpush.msrb.mxu0 %v2296_v25 }
 0x315   : > { %2316 = vmatpush.msrb.mxu0 %v2295_v15 }
 0x318   : > { %2715 = vmatmul.msk.f32.gmra.mxu0 %vm2018_vm7, %v2016_v19  ;;  %2731 = vmatmul.msk.f32.gmra.mxu3 %vm2018_vm7, %v2087_v12  ;;  %v2759_v19 = vld [vmem:[%s3989_s12 + $0x28] sm:$0xff]  ;;  %v2294_v12 = vld [vmem:[%s3989_s12] sm:$0xff] }
 0x319   : > { %2317 = vmatpush.msrb.mxu0 %v2294_v12 }
 0x388   : > { %v2067_v42 = vpop.f32.mrf.mxu2 }
 0x38d   : > { %v2040_v27 = vpop.f32.mrf.mxu0 }
 0x38e   : > { %v2068_v47 = vadd.f32 %v2067_v42, %v2040_v27 }
 0x390   : > { %v2070_v52 = vpop.f32.mrf.mxu2 }
 0x393   : > { %v2110_v51 = vpop.f32.mrf.mxu3 }
 0x394   : > { %v2116_v8 = vadd.f32 %v2110_v51, %v2068_v47 }
 0x395   : > { %v2043_v37 = vpop.f32.mrf.mxu0 }
 0x396   : > { %v2122_v50 = vadd.f32 %v2828_v48, %v2116_v8  ;;  %v2071_v21 = vadd.f32 %v2070_v52, %v2043_v37 }
 0x398   : > { %v2124_v59 = vmax.f32 %v2122_v50, 0.0 }
 0x39a   : > { %2743 = vmatmul.msk.f32.vlgmr.msra.gmra.mxu0 %vm2148_vm8, %v2124_v59  ;;  %v2145_v58 = vrot.slane %v2124_v59, 1  ;;  %v2208_v9 = vrot.slane %v2124_v59, 2 }
 0x39b   : > { %v2113_v53 = vpop.f32.mrf.mxu3  ;;  %2423 = vmatpush.msra.mxu0 %v2768_v29 }
 0x39c   : > { %v2117_v56 = vadd.f32 %v2113_v53, %v2071_v21 }
 0x39d   : > { %2424 = vmatpush.msra.mxu0 %v2767_v2 }
 0x39e   : > { %v2123_v57 = vadd.f32 %v2828_v48, %v2117_v56 }
 0x3a0   : > { %v2125_v1 = vmax.f32 %v2123_v57, 0.0 }
 0x3a2   : > { %v2146_v60 = vrot.slane %v2125_v1, 1  ;;  %v2209_v17 = vrot.slane %v2125_v1, 2 }
 0x3a4   : > { %v2147_v61 = vsel %vm542_vm1, %v2145_v58, %v2146_v60  ;;  %v2210_v44 = vsel %vm773_vm3, %v2208_v9, %v2209_v17 }
 0x3a5   : > { %2741 = vmatmul.msk.f32.vlgmr.msrb.gmra.mxu1 %vm2148_vm8, %v2147_v61  ;;  %2753 = vmatmul.msk.f32.vlgmr.msrb.gmra.mxu2 %vm2148_vm8, %v2210_v44 }
 0x417   : > { %v2196_v0 = vpop.f32.mrf.mxu0 }
 0x422   : > { %v2171_v55 = vpop.f32.mrf.mxu1 }
 0x423   : > { %v2197_v5 = vadd.f32 %v2196_v0, %v2171_v55 }
 0x428   : > { %v2233_v6 = vpop.f32.mrf.mxu2 }
 0x429   : > { %v2236_v7 = vadd.f32 %v2233_v6, %v2197_v5 }
 0x42b   : > { %v2241_v10 = vadd.f32 %v2829_v39, %v2236_v7 }
 0x42d   : > { %v2242_v40 = vmax.f32 %v2241_v10, 0.0 }
 0x42f   : > { %2263 = vmatpush.msra.mxu1 %v2242_v40  ;;  %2288 = vmatpush.msra.mxu3 %v2242_v40 }
 0x430   : > { %2756 = vmatmul.msk.f32.vlgmr.msra.gmra.mxu3 %vm2244_vm9, %v2755_v13  ;;  %2754 = vmatmul.msk.f32.vlgmr.msra.gmra.mxu1 %vm2244_vm9, %v2243_v23 }
 0x431   : > { %2339 = vmatpush.msrb.mxu1 %v2761_v14  ;;  %2396 = vmatpush.msrb.mxu3 %v2765_v32 }
 0x433   : > { %2340 = vmatpush.msrb.mxu1 %v2760_v22  ;;  %2397 = vmatpush.msrb.mxu3 %v2764_v41 }
 0x435   : > { %2341 = vmatpush.msrb.mxu1 %v2759_v19 }
 0x437   : > { %2342 = vmatpush.msrb.mxu1 %v2758_v28 }
 0x439   : > { %2450 = vmatpush.msra.mxu1 %v2771_v11 }
 0x43b   : > { %2451 = vmatpush.msra.mxu1 %v2770_v34 }
 0x4ad   : > { %v2265_v62 = vpop.f32.mrf.mxu1 }
 0x4b3   : > { %v2290_v24 = vpop.f32.mrf.mxu3 }
 0x4b4   : > { %v2293_v26 = vmax.f32 %v2265_v62, %v2290_v24 }
 0x4b6   : > { %2757 = vmatmul.msk.f32.vlgmr.msrb.gmra.mxu0 %vm2298_vm10, %v2293_v26  ;;  %2762 = vmatmul.msk.f32.vlgmr.msrb.gmra.mxu1 %vm2298_vm10, %v2293_v26 }
 0x533   : > { %v2319_v3 = vpop.f32.mrf.mxu0  ;;  %v2344_v54 = vpop.f32.mrf.mxu1 }
 0x534   : > { %v2347_v45 = vmax.f32 %v2319_v3, %v2344_v54 }
 0x536   : > { %v2379_v49 = vrot.slane %v2347_v45, 1  ;;  %v2406_v46 = vrot.slane %v2347_v45, 2  ;;  %v2433_v18 = vrot.slane %v2347_v45, 3  ;;  %2763 = vmatmul.msk.f32.vlgmr.msra.gmra.mxu2 %vm2351_vm11, %v2347_v45 }
 0x538   : > { %2766 = vmatmul.msk.f32.vlgmr.msrb.gmra.mxu3 %vm2351_vm11, %v2379_v49  ;;  %2769 = vmatmul.msk.f32.vlgmr.msra.gmra.mxu0 %vm2351_vm11, %v2406_v46 }
 0x539   : > { %2772 = vmatmul.msk.f32.vlgmr.msra.gmra.mxu1 %vm2351_vm11, %v2433_v18 }
 0x5b5   : > { %v2426_v35 = vpop.f32.mrf.mxu0 }
 0x5b6   : > { %v2453_v38 = vpop.f32.mrf.mxu1 }
 0x5b9   : > { %v2372_v63 = vpop.f32.mrf.mxu2 }
 0x5ba   : > { %v2375_v33 = vadd.f32 %v2372_v63, %v2348_v20 }
 0x5bb   : > { %v2399_v16 = vpop.f32.mrf.mxu3 }
 0x5bc   : > { %v2402_v4 = vadd.f32 %v2399_v16, %v2375_v33 }
 0x5be   : > { %v2429_v36 = vadd.f32 %v2426_v35, %v2402_v4 }
 0x5c0   : > { %v2456_v27 = vadd.f32 %v2453_v38, %v2429_v36 }
 0x5c2   : > { %v2458_v42 = vsel %vm2457_vm12, %v2456_v27, -inf }
 0x5c3   : > { %2459 = vmax.xlane.f32.xlu0 %v2458_v42 }
 0x636   : > { %v2460_v47 = vpop.xlane.xlu0 %2459 }
 0x637   : > { %v2461_v48 = vsub.f32 %v2456_v27, %v2460_v47 }
 0x639   : > { %v2462_v51 = vmul.f32 1.442695, %v2461_v48 }
 0x63b   : > { %2830 = vpow2.f32 %v2462_v51 }
 0x641   : > { %v2831_v8 = vpop.eup %2830 }
 0x642   : > { %v2464_v50 = vsel %vm2457_vm12, %v2831_v8, 0.0 }
 0x643   : > { %2465 = vadd.xlane.f32.xlu0 %v2464_v50 }
 0x6b6   : > { %v2466_v37 = vpop.xlane.xlu0 %2465 }
 0x6b7   : > { %2832 = vrcp.f32 %v2466_v37  ;;  %v2478_v53 = vand.u32 2147483648, %v2466_v37  ;;  %v2476_v57 = vand.u32 2147483647, %v2466_v37  ;;  %vm2472_vm14 = vweird.f32 %v2466_v37 }
 0x6b9   : > { %v2479_v58 = vor.u32 1.1754944e-38, %v2478_v53  ;;  %vm2477_vm0 = vcmp.eq.f32.partialorder %v2476_v57, 8.507059e+37 }
 0x6bd   : > { %v2833_v59 = vpop.eup %2832 }
 0x6be   : > { %v2468_v52 = vmul.f32 %v2833_v59, %v2466_v37  ;;  %vm2473_vm13 = vweird.f32 %v2833_v59 }
 0x6bf   : > { %vm2474_vm15 = vmor %vm2472_vm14, %vm2473_vm13 }
 0x6c0   : > { %v2469_v21 = vsub.f32 1.0, %v2468_v52 }
 0x6c2   : > { %v2470_v56 = vmul.f32 %v2833_v59, %v2469_v21 }
 0x6c4   : > { %v2471_v1 = vadd.f32 %v2833_v59, %v2470_v56 }
 0x6c6   : > { %v2475_v9 = vsel %vm2474_vm15, %v2833_v59, %v2471_v1 }
 0x6c7   : > { %v2480_v60 = vsel %vm2477_vm0, %v2479_v58, %v2475_v9 }
 0x6c8   : > { %v2481_v17 = vmul.f32 %v2831_v8, %v2480_v60 }
 0x6ca   : > { %2482 = vst.msk [vmem:[%s503_s23] sm:$0x1] %vm2457_vm12, %v2481_v17 }
 0x6cb   : > { %2891 = shalt.err (!%p2888_p8)
}
 0x6cc   : > { %2780 = dma.vmem_to_hbm [thread:$0]  (%p3053_p5), %s2495_s20, 16, %s2497_s24, %s2484_s17  }
 0x6cd PF: > { %p2792_p9 = scmp.ge.s32.totalorder %s2930_s21, 2  ;;  %s2508_s23 = sand.u32 1, %s2918_s18  }
 0x6ce   : > { %s2509_s26 = scalar_lea.sflag [#allocation4], %s2508_s23 }
 0x6cf   : > { %p2787_p10 = pnand %p2792_p9, %p3057_p6 }
 0x6d1   : > { %p2788_p11 = pneg %p2787_p10 }
 0x6d3   : > { %2913 = dma.done.wait (%p2788_p11), %s2509_s26, 16  }
 0x6d4   : > { %2915 = vsyncadd (%p2788_p11), %s2509_s26, 4294967280  ;;  %s4006_s21 = sld [smem:[#allocation9_spill]]  ;;  %s4009_s18 = smov %s2922_s19 }
 0x6d5   : > { %s4007_s25 = sld [smem:[#allocation8_spill]] }
 0x6d6   : > { %s4008_s20 = sld [smem:[#allocation10_spill]] }
 0x6da   : > { %p26_p12 = scmp.ge.s32.totalorder %s4006_s21, 4  }
 0x6db   : > { %s4010_s19 = smov %s4007_s25 }
 0x6dc   :  { %28 = sbr.rel (!%p26_p12) target bundleno = 6 (0x6), region = 135 }
 0x6e1   :  { %2514 = vsyncpa [#allocation3], 1 }
 0x6e2   :  { %2516 = vsyncpa [#allocation3 + $0x1], 1 }
 0x6e3   :  { %2517 = vsyncpa [#allocation4], 1 }
 0x6e4   :  { %2519 = vsyncpa [#allocation4 + $0x1], 1 }

</bundles_post_ra>
